<compile_context>
chip_gen: v5e
topology: v5e:2x2
jax: 0.10.0
libtpu: 0.0.40
codegen_flags: <defaults>
</compile_context>

<pallas_src>
import functools
import math

import jax
import jax.numpy as jnp
from jax.experimental import pallas as pl
from jax.experimental.pallas import tpu as pltpu  # noqa: F401  (TPU backend)


# ------------------------------ model config -------------------------------

CFG = dict(
    vocab_size=64,
    max_pos=32,
    hidden=32,
    num_heads=4,
    head_dim=8,
    intermediate=64,
    num_layers=2,
    out_dim=3,       # ChemBERT(out_dim)
)

LN_EPS = 1e-5
LANE = 128


# --------------------------- fused forward kernel ---------------------------

def _chembert_fused_kernel(
    # activations
    x_ref,                            # (B*S, H) summed embeddings
    # embedding LayerNorm
    emb_g_ref, emb_b_ref,             # (1, H)
    # stacked per-layer encoder params (leading axis = layer)
    wqkv_ref, bqkv_ref,               # (L, H, 3H), (L, 1, 3H)
    wo_ref, bo_ref,                   # (L, H, H),  (L, 1, H)
    ln1_g_ref, ln1_b_ref,             # (L, 1, H)
    w1_ref, b1_ref,                   # (L, H, I),  (L, 1, I)
    w2_ref, b2_ref,                   # (L, I, H),  (L, 1, H)
    ln2_g_ref, ln2_b_ref,             # (L, 1, H)
    # classification head
    cls_w_ref, cls_b_ref,             # (H, H), (1, H)
    out_w_ref, out_b_ref,             # (H, OUT_PAD), (1, OUT_PAD)
    # output
    o_ref,                            # (B, OUT_PAD)
    *, num_layers, batch, seq, num_heads, head_dim,
):
    hidden = num_heads * head_dim
    scale = 1.0 / math.sqrt(head_dim)

    def layer_norm(v, g, b):
        mean = jnp.mean(v, axis=-1, keepdims=True)
        cen = v - mean
        var = jnp.mean(cen * cen, axis=-1, keepdims=True)
        return cen * jax.lax.rsqrt(var + LN_EPS) * g + b

    # --- embedding LayerNorm (pure LN, no zeros residual) ---
    x = layer_norm(x_ref[...], emb_g_ref[...], emb_b_ref[...])

    # --- transformer encoder layers (statically unrolled; num_layers=2) ---
    for l in range(num_layers):
        # fused QKV projection: one (M, H) x (H, 3H) matmul
        # (for real ChemBERTa sizes cast the matmul operands to bf16 here; keep f32 accumulation)
        qkv = jnp.dot(x, wqkv_ref[l], preferred_element_type=jnp.float32) + bqkv_ref[l]
        q = qkv[:, 0:hidden] * scale            # fold softmax scale into q
        k = qkv[:, hidden:2 * hidden]
        v = qkv[:, 2 * hidden:3 * hidden]

        # multi-head attention on lane-dense slabs; static per-(batch, head) slices
        ctx_rows = []
        for b in range(batch):
            r0 = b * seq
            head_outs = []
            for h in range(num_heads):
                c0 = h * head_dim
                qs = q[r0:r0 + seq, c0:c0 + head_dim]
                ks = k[r0:r0 + seq, c0:c0 + head_dim]
                vs = v[r0:r0 + seq, c0:c0 + head_dim]
                s = jax.lax.dot_general(qs, ks, (((1,), (1,)), ((), ())),
                                        preferred_element_type=jnp.float32)
                s = s - jnp.max(s, axis=-1, keepdims=True)
                p = jnp.exp(s)
                p = p * pl.reciprocal(jnp.sum(p, axis=-1, keepdims=True), approx=True)
                head_outs.append(jnp.dot(p, vs, preferred_element_type=jnp.float32))
            ctx_rows.append(jnp.concatenate(head_outs, axis=-1))
        ctx = jnp.concatenate(ctx_rows, axis=0)                       # (B*S, H)

        attn_out = jnp.dot(ctx, wo_ref[l], preferred_element_type=jnp.float32) + bo_ref[l]
        x = layer_norm(attn_out + x, ln1_g_ref[l], ln1_b_ref[l])

        inter = jnp.dot(x, w1_ref[l], preferred_element_type=jnp.float32) + b1_ref[l]
        # TODO(synk): HF RoBERTa uses exact erf-GELU; tanh-approx used for guaranteed Mosaic lowering.
        inter = jax.nn.gelu(inter, approximate=True)
        ffn_out = jnp.dot(inter, w2_ref[l], preferred_element_type=jnp.float32) + b2_ref[l]
        x = layer_norm(ffn_out + x, ln2_g_ref[l], ln2_b_ref[l])

    # --- RobertaClassificationHead on the <s> token (row b*seq of each batch) ---
    cls = jnp.concatenate([x[b * seq:b * seq + 1, :] for b in range(batch)], axis=0)   # (B, H)
    cls = jnp.tanh(jnp.dot(cls, cls_w_ref[...], preferred_element_type=jnp.float32)
                   + cls_b_ref[...])
    logits = (jnp.dot(cls, out_w_ref[...], preferred_element_type=jnp.float32)
              + out_b_ref[...])                                                         # (B, OUT_PAD)
    o_ref[...] = logits.astype(o_ref.dtype)


def _full_spec(a):
    """Whole-array VMEM block for a no-grid pallas_call."""
    if a.ndim == 2:
        return pl.BlockSpec(a.shape, lambda: (0, 0))
    return pl.BlockSpec(a.shape, lambda: (0, 0, 0))


# ----------------------------- parameter packing ----------------------------

def init_params(key, cfg):
    H, I = cfg["hidden"], cfg["intermediate"]

    def normal(k, shape, std=0.02):
        return std * jax.random.normal(k, shape, dtype=jnp.float32)

    keys = iter(jax.random.split(key, 128))
    params = {
        "word_emb": normal(next(keys), (cfg["vocab_size"], H)),
        "pos_emb": normal(next(keys), (cfg["max_pos"], H)),
        "type_emb": normal(next(keys), (1, H)),
        "emb_ln_g": jnp.ones((H,), jnp.float32),
        "emb_ln_b": jnp.zeros((H,), jnp.float32),
        "layers": [],
        "cls_dense_w": normal(next(keys), (H, H)),
        "cls_dense_b": jnp.zeros((H,), jnp.float32),
        "cls_out_w": normal(next(keys), (H, cfg["out_dim"])),
        "cls_out_b": jnp.zeros((cfg["out_dim"],), jnp.float32),
    }
    for _ in range(cfg["num_layers"]):
        params["layers"].append({
            "wq": normal(next(keys), (H, H)), "bq": jnp.zeros((H,), jnp.float32),
            "wk": normal(next(keys), (H, H)), "bk": jnp.zeros((H,), jnp.float32),
            "wv": normal(next(keys), (H, H)), "bv": jnp.zeros((H,), jnp.float32),
            "wo": normal(next(keys), (H, H)), "bo": jnp.zeros((H,), jnp.float32),
            "ln1_g": jnp.ones((H,), jnp.float32), "ln1_b": jnp.zeros((H,), jnp.float32),
            "w1": normal(next(keys), (H, I)), "b1": jnp.zeros((I,), jnp.float32),
            "w2": normal(next(keys), (I, H)), "b2": jnp.zeros((H,), jnp.float32),
            "ln2_g": jnp.ones((H,), jnp.float32), "ln2_b": jnp.zeros((H,), jnp.float32),
        })
    return params


def pack_params(params, cfg):
    """One-time repack: stack per-layer params, fuse QKV, pad logits weights lane-dense."""
    H, I, L = cfg["hidden"], cfg["intermediate"], cfg["num_layers"]
    out_dim = cfg["out_dim"]
    out_pad = ((out_dim + LANE - 1) // LANE) * LANE

    def stack(name):
        return jnp.stack([lyr[name] for lyr in params["layers"]])

    wqkv = jnp.concatenate([stack("wq"), stack("wk"), stack("wv")], axis=-1)     # (L, H, 3H)
    bqkv = jnp.concatenate([stack("bq"), stack("bk"), stack("bv")], axis=-1)     # (L, 3H)

    out_w = jnp.zeros((H, out_pad), jnp.float32).at[:, :out_dim].set(params["cls_out_w"])
    out_b = jnp.zeros((1, out_pad), jnp.float32).at[0, :out_dim].set(params["cls_out_b"])

    return dict(
        word_emb=params["word_emb"], pos_emb=params["pos_emb"], type_emb=params["type_emb"],
        emb_g=params["emb_ln_g"].reshape(1, H), emb_b=params["emb_ln_b"].reshape(1, H),
        wqkv=wqkv, bqkv=bqkv.reshape(L, 1, 3 * H),
        wo=stack("wo"), bo=stack("bo").reshape(L, 1, H),
        ln1_g=stack("ln1_g").reshape(L, 1, H), ln1_b=stack("ln1_b").reshape(L, 1, H),
        w1=stack("w1"), b1=stack("b1").reshape(L, 1, I),
        w2=stack("w2"), b2=stack("b2").reshape(L, 1, H),
        ln2_g=stack("ln2_g").reshape(L, 1, H), ln2_b=stack("ln2_b").reshape(L, 1, H),
        cls_w=params["cls_dense_w"], cls_b=params["cls_dense_b"].reshape(1, H),
        out_w=out_w, out_b=out_b,
    )


# ------------------------------- forward pass -------------------------------

def chembert_forward(packed, input_ids, cfg=CFG):
    B, S = input_ids.shape
    H = cfg["hidden"]
    out_dim = cfg["out_dim"]
    out_pad = packed["out_w"].shape[1]

    # --- embeddings (gather kept in plain-JAX glue) ---
    # TODO(synk): position ids assume no padding tokens (RoBERTa padding_idx=1 -> offset +2).
    pos_ids = jnp.arange(S, dtype=jnp.int32) + 2
    x = (packed["word_emb"][input_ids]
         + packed["pos_emb"][pos_ids][None, :, :]
         + packed["type_emb"][0][None, None, :])
    x = x.reshape(B * S, H).astype(jnp.float32)

    kernel = functools.partial(
        _chembert_fused_kernel,
        num_layers=cfg["num_layers"], batch=B, seq=S,
        num_heads=cfg["num_heads"], head_dim=cfg["head_dim"],
    )

    operands = (
        x,
        packed["emb_g"], packed["emb_b"],
        packed["wqkv"], packed["bqkv"],
        packed["wo"], packed["bo"],
        packed["ln1_g"], packed["ln1_b"],
        packed["w1"], packed["b1"],
        packed["w2"], packed["b2"],
        packed["ln2_g"], packed["ln2_b"],
        packed["cls_w"], packed["cls_b"],
        packed["out_w"], packed["out_b"],
    )

    logits_pad = pl.pallas_call(
        kernel,
        out_shape=jax.ShapeDtypeStruct((B, out_pad), jnp.float32),
        in_specs=[_full_spec(a) for a in operands],
        out_specs=pl.BlockSpec((B, out_pad), lambda: (0, 0)),
    )(*operands)

    return logits_pad[:, :out_dim]


# ---------------------------------- main ------------------------------------

if __name__ == "__main__":
    key = jax.random.PRNGKey(0)
    k_param, k_ids = jax.random.split(key)

    params = init_params(k_param, CFG)
    packed = pack_params(params, CFG)      # one-time packing, outside jit

    batch, seq = 2, 8
    input_ids = jax.random.randint(k_ids, (batch, seq), 0, CFG["vocab_size"],
                                   dtype=jnp.int32)

    fwd = jax.jit(functools.partial(chembert_forward, cfg=CFG))
    logits = fwd(packed, input_ids)
    logits = jax.block_until_ready(logits)

    assert logits.shape == (batch, CFG["out_dim"])
    assert logits.dtype == jnp.float32
    assert bool(jnp.all(jnp.isfinite(logits)))
    print("KERNEL_OK")
</pallas_src>

<mosaic_0001>
module attributes {stable_mosaic.version = 11 : i64} {
  func.func @_chembert_fused_kernel(%arg0: memref<16x32xf32, #tpu.memory_space<vmem>>, %arg1: memref<1x32xf32, #tpu.memory_space<vmem>>, %arg2: memref<1x32xf32, #tpu.memory_space<vmem>>, %arg3: memref<2x32x96xf32, #tpu.memory_space<vmem>>, %arg4: memref<2x1x96xf32, #tpu.memory_space<vmem>>, %arg5: memref<2x32x32xf32, #tpu.memory_space<vmem>>, %arg6: memref<2x1x32xf32, #tpu.memory_space<vmem>>, %arg7: memref<2x1x32xf32, #tpu.memory_space<vmem>>, %arg8: memref<2x1x32xf32, #tpu.memory_space<vmem>>, %arg9: memref<2x32x64xf32, #tpu.memory_space<vmem>>, %arg10: memref<2x1x64xf32, #tpu.memory_space<vmem>>, %arg11: memref<2x64x32xf32, #tpu.memory_space<vmem>>, %arg12: memref<2x1x32xf32, #tpu.memory_space<vmem>>, %arg13: memref<2x1x32xf32, #tpu.memory_space<vmem>>, %arg14: memref<2x1x32xf32, #tpu.memory_space<vmem>>, %arg15: memref<32x32xf32, #tpu.memory_space<vmem>>, %arg16: memref<1x32xf32, #tpu.memory_space<vmem>>, %arg17: memref<32x128xf32, #tpu.memory_space<vmem>>, %arg18: memref<1x128xf32, #tpu.memory_space<vmem>>, %arg19: memref<2x128xf32, #tpu.memory_space<vmem>>) attributes {dimension_semantics = [], scalar_prefetch = 0 : i64, scratch_operands = 0 : i64, tpu.core_type = #tpu.core_type<tc>} {
    %c0 = arith.constant 0 : index
    %c0_0 = arith.constant 0 : index
    %0 = vector.load %arg0[%c0, %c0_0] : memref<16x32xf32, #tpu.memory_space<vmem>>, vector<16x32xf32>
    %c0_1 = arith.constant 0 : index
    %c0_2 = arith.constant 0 : index
    %1 = vector.load %arg1[%c0_1, %c0_2] : memref<1x32xf32, #tpu.memory_space<vmem>>, vector<1x32xf32>
    %c0_3 = arith.constant 0 : index
    %c0_4 = arith.constant 0 : index
    %2 = vector.load %arg2[%c0_3, %c0_4] : memref<1x32xf32, #tpu.memory_space<vmem>>, vector<1x32xf32>
    %cst = arith.constant dense<0.000000e+00> : vector<16xf32>
    %3 = vector.multi_reduction <add>, %0, %cst [1] : vector<16x32xf32> to vector<16xf32>
    %4 = vector.shape_cast %3 : vector<16xf32> to vector<16x1xf32>
    %cst_5 = arith.constant 3.200000e+01 : f32
    %5 = vector.broadcast %cst_5 : f32 to vector<16x1xf32>
    %6 = arith.divf %4, %5 : vector<16x1xf32>
    %7 = vector.broadcast %6 : vector<16x1xf32> to vector<16x32xf32>
    %8 = arith.subf %0, %7 : vector<16x32xf32>
    %9 = arith.mulf %8, %8 : vector<16x32xf32>
    %cst_6 = arith.constant dense<0.000000e+00> : vector<16xf32>
    %10 = vector.multi_reduction <add>, %9, %cst_6 [1] : vector<16x32xf32> to vector<16xf32>
    %11 = vector.shape_cast %10 : vector<16xf32> to vector<16x1xf32>
    %cst_7 = arith.constant 3.200000e+01 : f32
    %12 = vector.broadcast %cst_7 : f32 to vector<16x1xf32>
    %13 = arith.divf %11, %12 : vector<16x1xf32>
    %cst_8 = arith.constant 9.99999974E-6 : f32
    %14 = vector.broadcast %cst_8 : f32 to vector<16x1xf32>
    %15 = arith.addf %13, %14 : vector<16x1xf32>
    %16 = math.rsqrt %15 : vector<16x1xf32>
    %17 = vector.broadcast %16 : vector<16x1xf32> to vector<16x32xf32>
    %18 = arith.mulf %8, %17 : vector<16x32xf32>
    %19 = vector.broadcast %1 : vector<1x32xf32> to vector<16x32xf32>
    %20 = arith.mulf %18, %19 : vector<16x32xf32>
    %21 = vector.broadcast %2 : vector<1x32xf32> to vector<16x32xf32>
    %22 = arith.addf %20, %21 : vector<16x32xf32>
    %c0_9 = arith.constant 0 : index
    %c0_10 = arith.constant 0 : index
    %c0_11 = arith.constant 0 : index
    %23 = vector.load %arg3[%c0_9, %c0_10, %c0_11] : memref<2x32x96xf32, #tpu.memory_space<vmem>>, vector<1x32x96xf32>
    %24 = vector.shape_cast %23 : vector<1x32x96xf32> to vector<32x96xf32>
    %cst_12 = arith.constant dense<0.000000e+00> : vector<16x96xf32>
    %25 = tpu.matmul %22, %24, %cst_12 {dimension_numbers = #tpu.dot_dimension_numbers<[1], [0], [0], [1], [0, 0, 1, 1], [], []>} : vector<16x32xf32>, vector<32x96xf32>, vector<16x96xf32> -> vector<16x96xf32>
    %c0_13 = arith.constant 0 : index
    %c0_14 = arith.constant 0 : index
    %c0_15 = arith.constant 0 : index
    %26 = vector.load %arg4[%c0_13, %c0_14, %c0_15] : memref<2x1x96xf32, #tpu.memory_space<vmem>>, vector<1x1x96xf32>
    %27 = vector.shape_cast %26 : vector<1x1x96xf32> to vector<1x96xf32>
    %28 = vector.broadcast %27 : vector<1x96xf32> to vector<16x96xf32>
    %29 = arith.addf %25, %28 : vector<16x96xf32>
    %30 = vector.extract_strided_slice %29 {offsets = [0, 0], sizes = [16, 32], strides = [1, 1]} : vector<16x96xf32> to vector<16x32xf32>
    %cst_16 = arith.constant 0.353553385 : f32
    %31 = vector.broadcast %cst_16 : f32 to vector<16x32xf32>
    %32 = arith.mulf %30, %31 : vector<16x32xf32>
    %33 = vector.extract_strided_slice %29 {offsets = [0, 32], sizes = [16, 32], strides = [1, 1]} : vector<16x96xf32> to vector<16x32xf32>
    %34 = vector.extract_strided_slice %29 {offsets = [0, 64], sizes = [16, 32], strides = [1, 1]} : vector<16x96xf32> to vector<16x32xf32>
    %35 = vector.extract_strided_slice %32 {offsets = [0, 0], sizes = [8, 8], strides = [1, 1]} : vector<16x32xf32> to vector<8x8xf32>
    %36 = vector.extract_strided_slice %33 {offsets = [0, 0], sizes = [8, 8], strides = [1, 1]} : vector<16x32xf32> to vector<8x8xf32>
    %37 = vector.extract_strided_slice %34 {offsets = [0, 0], sizes = [8, 8], strides = [1, 1]} : vector<16x32xf32> to vector<8x8xf32>
    %cst_17 = arith.constant dense<0.000000e+00> : vector<8x8xf32>
    %38 = tpu.matmul %35, %36, %cst_17 {dimension_numbers = #tpu.dot_dimension_numbers<[1], [1], [0], [0], [0, 0, 1, 0], [], []>} : vector<8x8xf32>, vector<8x8xf32>, vector<8x8xf32> -> vector<8x8xf32>
    %cst_18 = arith.constant dense<0xFF800000> : vector<8xf32>
    %39 = vector.multi_reduction <maximumf>, %38, %cst_18 [1] : vector<8x8xf32> to vector<8xf32>
    %40 = vector.shape_cast %39 : vector<8xf32> to vector<8x1xf32>
    %41 = vector.broadcast %40 : vector<8x1xf32> to vector<8x8xf32>
    %42 = arith.subf %38, %41 : vector<8x8xf32>
    %43 = math.exp %42 : vector<8x8xf32>
    %cst_19 = arith.constant dense<0.000000e+00> : vector<8xf32>
    %44 = vector.multi_reduction <add>, %43, %cst_19 [1] : vector<8x8xf32> to vector<8xf32>
    %45 = vector.shape_cast %44 : vector<8xf32> to vector<8x1xf32>
    %46 = tpu.reciprocal %45 {approx = true} : vector<8x1xf32> -> vector<8x1xf32>
    %47 = vector.broadcast %46 : vector<8x1xf32> to vector<8x8xf32>
    %48 = arith.mulf %43, %47 : vector<8x8xf32>
    %cst_20 = arith.constant dense<0.000000e+00> : vector<8x8xf32>
    %49 = tpu.matmul %48, %37, %cst_20 {dimension_numbers = #tpu.dot_dimension_numbers<[1], [0], [0], [1], [0, 0, 1, 1], [], []>} : vector<8x8xf32>, vector<8x8xf32>, vector<8x8xf32> -> vector<8x8xf32>
    %50 = vector.extract_strided_slice %32 {offsets = [0, 8], sizes = [8, 8], strides = [1, 1]} : vector<16x32xf32> to vector<8x8xf32>
    %51 = vector.extract_strided_slice %33 {offsets = [0, 8], sizes = [8, 8], strides = [1, 1]} : vector<16x32xf32> to vector<8x8xf32>
    %52 = vector.extract_strided_slice %34 {offsets = [0, 8], sizes = [8, 8], strides = [1, 1]} : vector<16x32xf32> to vector<8x8xf32>
    %cst_21 = arith.constant dense<0.000000e+00> : vector<8x8xf32>
    %53 = tpu.matmul %50, %51, %cst_21 {dimension_numbers = #tpu.dot_dimension_numbers<[1], [1], [0], [0], [0, 0, 1, 0], [], []>} : vector<8x8xf32>, vector<8x8xf32>, vector<8x8xf32> -> vector<8x8xf32>
    %cst_22 = arith.constant dense<0xFF800000> : vector<8xf32>
    %54 = vector.multi_reduction <maximumf>, %53, %cst_22 [1] : vector<8x8xf32> to vector<8xf32>
    %55 = vector.shape_cast %54 : vector<8xf32> to vector<8x1xf32>
    %56 = vector.broadcast %55 : vector<8x1xf32> to vector<8x8xf32>
    %57 = arith.subf %53, %56 : vector<8x8xf32>
    %58 = math.exp %57 : vector<8x8xf32>
    %cst_23 = arith.constant dense<0.000000e+00> : vector<8xf32>
    %59 = vector.multi_reduction <add>, %58, %cst_23 [1] : vector<8x8xf32> to vector<8xf32>
    %60 = vector.shape_cast %59 : vector<8xf32> to vector<8x1xf32>
    %61 = tpu.reciprocal %60 {approx = true} : vector<8x1xf32> -> vector<8x1xf32>
    %62 = vector.broadcast %61 : vector<8x1xf32> to vector<8x8xf32>
    %63 = arith.mulf %58, %62 : vector<8x8xf32>
    %cst_24 = arith.constant dense<0.000000e+00> : vector<8x8xf32>
    %64 = tpu.matmul %63, %52, %cst_24 {dimension_numbers = #tpu.dot_dimension_numbers<[1], [0], [0], [1], [0, 0, 1, 1], [], []>} : vector<8x8xf32>, vector<8x8xf32>, vector<8x8xf32> -> vector<8x8xf32>
    %65 = vector.extract_strided_slice %32 {offsets = [0, 16], sizes = [8, 8], strides = [1, 1]} : vector<16x32xf32> to vector<8x8xf32>
    %66 = vector.extract_strided_slice %33 {offsets = [0, 16], sizes = [8, 8], strides = [1, 1]} : vector<16x32xf32> to vector<8x8xf32>
    %67 = vector.extract_strided_slice %34 {offsets = [0, 16], sizes = [8, 8], strides = [1, 1]} : vector<16x32xf32> to vector<8x8xf32>
    %cst_25 = arith.constant dense<0.000000e+00> : vector<8x8xf32>
    %68 = tpu.matmul %65, %66, %cst_25 {dimension_numbers = #tpu.dot_dimension_numbers<[1], [1], [0], [0], [0, 0, 1, 0], [], []>} : vector<8x8xf32>, vector<8x8xf32>, vector<8x8xf32> -> vector<8x8xf32>
    %cst_26 = arith.constant dense<0xFF800000> : vector<8xf32>
    %69 = vector.multi_reduction <maximumf>, %68, %cst_26 [1] : vector<8x8xf32> to vector<8xf32>
    %70 = vector.shape_cast %69 : vector<8xf32> to vector<8x1xf32>
    %71 = vector.broadcast %70 : vector<8x1xf32> to vector<8x8xf32>
    %72 = arith.subf %68, %71 : vector<8x8xf32>
    %73 = math.exp %72 : vector<8x8xf32>
    %cst_27 = arith.constant dense<0.000000e+00> : vector<8xf32>
    %74 = vector.multi_reduction <add>, %73, %cst_27 [1] : vector<8x8xf32> to vector<8xf32>
    %75 = vector.shape_cast %74 : vector<8xf32> to vector<8x1xf32>
    %76 = tpu.reciprocal %75 {approx = true} : vector<8x1xf32> -> vector<8x1xf32>
    %77 = vector.broadcast %76 : vector<8x1xf32> to vector<8x8xf32>
    %78 = arith.mulf %73, %77 : vector<8x8xf32>
    %cst_28 = arith.constant dense<0.000000e+00> : vector<8x8xf32>
    %79 = tpu.matmul %78, %67, %cst_28 {dimension_numbers = #tpu.dot_dimension_numbers<[1], [0], [0], [1], [0, 0, 1, 1], [], []>} : vector<8x8xf32>, vector<8x8xf32>, vector<8x8xf32> -> vector<8x8xf32>
    %80 = vector.extract_strided_slice %32 {offsets = [0, 24], sizes = [8, 8], strides = [1, 1]} : vector<16x32xf32> to vector<8x8xf32>
    %81 = vector.extract_strided_slice %33 {offsets = [0, 24], sizes = [8, 8], strides = [1, 1]} : vector<16x32xf32> to vector<8x8xf32>
    %82 = vector.extract_strided_slice %34 {offsets = [0, 24], sizes = [8, 8], strides = [1, 1]} : vector<16x32xf32> to vector<8x8xf32>
    %cst_29 = arith.constant dense<0.000000e+00> : vector<8x8xf32>
    %83 = tpu.matmul %80, %81, %cst_29 {dimension_numbers = #tpu.dot_dimension_numbers<[1], [1], [0], [0], [0, 0, 1, 0], [], []>} : vector<8x8xf32>, vector<8x8xf32>, vector<8x8xf32> -> vector<8x8xf32>
    %cst_30 = arith.constant dense<0xFF800000> : vector<8xf32>
    %84 = vector.multi_reduction <maximumf>, %83, %cst_30 [1] : vector<8x8xf32> to vector<8xf32>
    %85 = vector.shape_cast %84 : vector<8xf32> to vector<8x1xf32>
    %86 = vector.broadcast %85 : vector<8x1xf32> to vector<8x8xf32>
    %87 = arith.subf %83, %86 : vector<8x8xf32>
    %88 = math.exp %87 : vector<8x8xf32>
    %cst_31 = arith.constant dense<0.000000e+00> : vector<8xf32>
    %89 = vector.multi_reduction <add>, %88, %cst_31 [1] : vector<8x8xf32> to vector<8xf32>
    %90 = vector.shape_cast %89 : vector<8xf32> to vector<8x1xf32>
    %91 = tpu.reciprocal %90 {approx = true} : vector<8x1xf32> -> vector<8x1xf32>
    %92 = vector.broadcast %91 : vector<8x1xf32> to vector<8x8xf32>
    %93 = arith.mulf %88, %92 : vector<8x8xf32>
    %cst_32 = arith.constant dense<0.000000e+00> : vector<8x8xf32>
    %94 = tpu.matmul %93, %82, %cst_32 {dimension_numbers = #tpu.dot_dimension_numbers<[1], [0], [0], [1], [0, 0, 1, 1], [], []>} : vector<8x8xf32>, vector<8x8xf32>, vector<8x8xf32> -> vector<8x8xf32>
    %95 = tpu.concatenate %49, %64, %79, %94 in 1 : vector<8x8xf32>, vector<8x8xf32>, vector<8x8xf32>, vector<8x8xf32> -> vector<8x32xf32>
    %96 = vector.extract_strided_slice %32 {offsets = [8, 0], sizes = [8, 8], strides = [1, 1]} : vector<16x32xf32> to vector<8x8xf32>
    %97 = vector.extract_strided_slice %33 {offsets = [8, 0], sizes = [8, 8], strides = [1, 1]} : vector<16x32xf32> to vector<8x8xf32>
    %98 = vector.extract_strided_slice %34 {offsets = [8, 0], sizes = [8, 8], strides = [1, 1]} : vector<16x32xf32> to vector<8x8xf32>
    %cst_33 = arith.constant dense<0.000000e+00> : vector<8x8xf32>
    %99 = tpu.matmul %96, %97, %cst_33 {dimension_numbers = #tpu.dot_dimension_numbers<[1], [1], [0], [0], [0, 0, 1, 0], [], []>} : vector<8x8xf32>, vector<8x8xf32>, vector<8x8xf32> -> vector<8x8xf32>
    %cst_34 = arith.constant dense<0xFF800000> : vector<8xf32>
    %100 = vector.multi_reduction <maximumf>, %99, %cst_34 [1] : vector<8x8xf32> to vector<8xf32>
    %101 = vector.shape_cast %100 : vector<8xf32> to vector<8x1xf32>
    %102 = vector.broadcast %101 : vector<8x1xf32> to vector<8x8xf32>
    %103 = arith.subf %99, %102 : vector<8x8xf32>
    %104 = math.exp %103 : vector<8x8xf32>
    %cst_35 = arith.constant dense<0.000000e+00> : vector<8xf32>
    %105 = vector.multi_reduction <add>, %104, %cst_35 [1] : vector<8x8xf32> to vector<8xf32>
    %106 = vector.shape_cast %105 : vector<8xf32> to vector<8x1xf32>
    %107 = tpu.reciprocal %106 {approx = true} : vector<8x1xf32> -> vector<8x1xf32>
    %108 = vector.broadcast %107 : vector<8x1xf32> to vector<8x8xf32>
    %109 = arith.mulf %104, %108 : vector<8x8xf32>
    %cst_36 = arith.constant dense<0.000000e+00> : vector<8x8xf32>
    %110 = tpu.matmul %109, %98, %cst_36 {dimension_numbers = #tpu.dot_dimension_numbers<[1], [0], [0], [1], [0, 0, 1, 1], [], []>} : vector<8x8xf32>, vector<8x8xf32>, vector<8x8xf32> -> vector<8x8xf32>
    %111 = vector.extract_strided_slice %32 {offsets = [8, 8], sizes = [8, 8], strides = [1, 1]} : vector<16x32xf32> to vector<8x8xf32>
    %112 = vector.extract_strided_slice %33 {offsets = [8, 8], sizes = [8, 8], strides = [1, 1]} : vector<16x32xf32> to vector<8x8xf32>
    %113 = vector.extract_strided_slice %34 {offsets = [8, 8], sizes = [8, 8], strides = [1, 1]} : vector<16x32xf32> to vector<8x8xf32>
    %cst_37 = arith.constant dense<0.000000e+00> : vector<8x8xf32>
    %114 = tpu.matmul %111, %112, %cst_37 {dimension_numbers = #tpu.dot_dimension_numbers<[1], [1], [0], [0], [0, 0, 1, 0], [], []>} : vector<8x8xf32>, vector<8x8xf32>, vector<8x8xf32> -> vector<8x8xf32>
    %cst_38 = arith.constant dense<0xFF800000> : vector<8xf32>
    %115 = vector.multi_reduction <maximumf>, %114, %cst_38 [1] : vector<8x8xf32> to vector<8xf32>
    %116 = vector.shape_cast %115 : vector<8xf32> to vector<8x1xf32>
    %117 = vector.broadcast %116 : vector<8x1xf32> to vector<8x8xf32>
    %118 = arith.subf %114, %117 : vector<8x8xf32>
    %119 = math.exp %118 : vector<8x8xf32>
    %cst_39 = arith.constant dense<0.000000e+00> : vector<8xf32>
    %120 = vector.multi_reduction <add>, %119, %cst_39 [1] : vector<8x8xf32> to vector<8xf32>
    %121 = vector.shape_cast %120 : vector<8xf32> to vector<8x1xf32>
    %122 = tpu.reciprocal %121 {approx = true} : vector<8x1xf32> -> vector<8x1xf32>
    %123 = vector.broadcast %122 : vector<8x1xf32> to vector<8x8xf32>
    %124 = arith.mulf %119, %123 : vector<8x8xf32>
    %cst_40 = arith.constant dense<0.000000e+00> : vector<8x8xf32>
    %125 = tpu.matmul %124, %113, %cst_40 {dimension_numbers = #tpu.dot_dimension_numbers<[1], [0], [0], [1], [0, 0, 1, 1], [], []>} : vector<8x8xf32>, vector<8x8xf32>, vector<8x8xf32> -> vector<8x8xf32>
    %126 = vector.extract_strided_slice %32 {offsets = [8, 16], sizes = [8, 8], strides = [1, 1]} : vector<16x32xf32> to vector<8x8xf32>
    %127 = vector.extract_strided_slice %33 {offsets = [8, 16], sizes = [8, 8], strides = [1, 1]} : vector<16x32xf32> to vector<8x8xf32>
    %128 = vector.extract_strided_slice %34 {offsets = [8, 16], sizes = [8, 8], strides = [1, 1]} : vector<16x32xf32> to vector<8x8xf32>
    %cst_41 = arith.constant dense<0.000000e+00> : vector<8x8xf32>
    %129 = tpu.matmul %126, %127, %cst_41 {dimension_numbers = #tpu.dot_dimension_numbers<[1], [1], [0], [0], [0, 0, 1, 0], [], []>} : vector<8x8xf32>, vector<8x8xf32>, vector<8x8xf32> -> vector<8x8xf32>
    %cst_42 = arith.constant dense<0xFF800000> : vector<8xf32>
    %130 = vector.multi_reduction <maximumf>, %129, %cst_42 [1] : vector<8x8xf32> to vector<8xf32>
    %131 = vector.shape_cast %130 : vector<8xf32> to vector<8x1xf32>
    %132 = vector.broadcast %131 : vector<8x1xf32> to vector<8x8xf32>
    %133 = arith.subf %129, %132 : vector<8x8xf32>
    %134 = math.exp %133 : vector<8x8xf32>
    %cst_43 = arith.constant dense<0.000000e+00> : vector<8xf32>
    %135 = vector.multi_reduction <add>, %134, %cst_43 [1] : vector<8x8xf32> to vector<8xf32>
    %136 = vector.shape_cast %135 : vector<8xf32> to vector<8x1xf32>
    %137 = tpu.reciprocal %136 {approx = true} : vector<8x1xf32> -> vector<8x1xf32>
    %138 = vector.broadcast %137 : vector<8x1xf32> to vector<8x8xf32>
    %139 = arith.mulf %134, %138 : vector<8x8xf32>
    %cst_44 = arith.constant dense<0.000000e+00> : vector<8x8xf32>
    %140 = tpu.matmul %139, %128, %cst_44 {dimension_numbers = #tpu.dot_dimension_numbers<[1], [0], [0], [1], [0, 0, 1, 1], [], []>} : vector<8x8xf32>, vector<8x8xf32>, vector<8x8xf32> -> vector<8x8xf32>
    %141 = vector.extract_strided_slice %32 {offsets = [8, 24], sizes = [8, 8], strides = [1, 1]} : vector<16x32xf32> to vector<8x8xf32>
    %142 = vector.extract_strided_slice %33 {offsets = [8, 24], sizes = [8, 8], strides = [1, 1]} : vector<16x32xf32> to vector<8x8xf32>
    %143 = vector.extract_strided_slice %34 {offsets = [8, 24], sizes = [8, 8], strides = [1, 1]} : vector<16x32xf32> to vector<8x8xf32>
    %cst_45 = arith.constant dense<0.000000e+00> : vector<8x8xf32>
    %144 = tpu.matmul %141, %142, %cst_45 {dimension_numbers = #tpu.dot_dimension_numbers<[1], [1], [0], [0], [0, 0, 1, 0], [], []>} : vector<8x8xf32>, vector<8x8xf32>, vector<8x8xf32> -> vector<8x8xf32>
    %cst_46 = arith.constant dense<0xFF800000> : vector<8xf32>
    %145 = vector.multi_reduction <maximumf>, %144, %cst_46 [1] : vector<8x8xf32> to vector<8xf32>
    %146 = vector.shape_cast %145 : vector<8xf32> to vector<8x1xf32>
    %147 = vector.broadcast %146 : vector<8x1xf32> to vector<8x8xf32>
    %148 = arith.subf %144, %147 : vector<8x8xf32>
    %149 = math.exp %148 : vector<8x8xf32>
    %cst_47 = arith.constant dense<0.000000e+00> : vector<8xf32>
    %150 = vector.multi_reduction <add>, %149, %cst_47 [1] : vector<8x8xf32> to vector<8xf32>
    %151 = vector.shape_cast %150 : vector<8xf32> to vector<8x1xf32>
    %152 = tpu.reciprocal %151 {approx = true} : vector<8x1xf32> -> vector<8x1xf32>
    %153 = vector.broadcast %152 : vector<8x1xf32> to vector<8x8xf32>
    %154 = arith.mulf %149, %153 : vector<8x8xf32>
    %cst_48 = arith.constant dense<0.000000e+00> : vector<8x8xf32>
    %155 = tpu.matmul %154, %143, %cst_48 {dimension_numbers = #tpu.dot_dimension_numbers<[1], [0], [0], [1], [0, 0, 1, 1], [], []>} : vector<8x8xf32>, vector<8x8xf32>, vector<8x8xf32> -> vector<8x8xf32>
    %156 = tpu.concatenate %110, %125, %140, %155 in 1 : vector<8x8xf32>, vector<8x8xf32>, vector<8x8xf32>, vector<8x8xf32> -> vector<8x32xf32>
    %157 = tpu.concatenate %95, %156 in 0 : vector<8x32xf32>, vector<8x32xf32> -> vector<16x32xf32>
    %c0_49 = arith.constant 0 : index
    %c0_50 = arith.constant 0 : index
    %c0_51 = arith.constant 0 : index
    %158 = vector.load %arg5[%c0_49, %c0_50, %c0_51] : memref<2x32x32xf32, #tpu.memory_space<vmem>>, vector<1x32x32xf32>
    %159 = vector.shape_cast %158 : vector<1x32x32xf32> to vector<32x32xf32>
    %cst_52 = arith.constant dense<0.000000e+00> : vector<16x32xf32>
    %160 = tpu.matmul %157, %159, %cst_52 {dimension_numbers = #tpu.dot_dimension_numbers<[1], [0], [0], [1], [0, 0, 1, 1], [], []>} : vector<16x32xf32>, vector<32x32xf32>, vector<16x32xf32> -> vector<16x32xf32>
    %c0_53 = arith.constant 0 : index
    %c0_54 = arith.constant 0 : index
    %c0_55 = arith.constant 0 : index
    %161 = vector.load %arg6[%c0_53, %c0_54, %c0_55] : memref<2x1x32xf32, #tpu.memory_space<vmem>>, vector<1x1x32xf32>
    %162 = vector.shape_cast %161 : vector<1x1x32xf32> to vector<1x32xf32>
    %163 = vector.broadcast %162 : vector<1x32xf32> to vector<16x32xf32>
    %164 = arith.addf %160, %163 : vector<16x32xf32>
    %165 = arith.addf %164, %22 : vector<16x32xf32>
    %c0_56 = arith.constant 0 : index
    %c0_57 = arith.constant 0 : index
    %c0_58 = arith.constant 0 : index
    %166 = vector.load %arg7[%c0_56, %c0_57, %c0_58] : memref<2x1x32xf32, #tpu.memory_space<vmem>>, vector<1x1x32xf32>
    %167 = vector.shape_cast %166 : vector<1x1x32xf32> to vector<1x32xf32>
    %c0_59 = arith.constant 0 : index
    %c0_60 = arith.constant 0 : index
    %c0_61 = arith.constant 0 : index
    %168 = vector.load %arg8[%c0_59, %c0_60, %c0_61] : memref<2x1x32xf32, #tpu.memory_space<vmem>>, vector<1x1x32xf32>
    %169 = vector.shape_cast %168 : vector<1x1x32xf32> to vector<1x32xf32>
    %cst_62 = arith.constant dense<0.000000e+00> : vector<16xf32>
    %170 = vector.multi_reduction <add>, %165, %cst_62 [1] : vector<16x32xf32> to vector<16xf32>
    %171 = vector.shape_cast %170 : vector<16xf32> to vector<16x1xf32>
    %cst_63 = arith.constant 3.200000e+01 : f32
    %172 = vector.broadcast %cst_63 : f32 to vector<16x1xf32>
    %173 = arith.divf %171, %172 : vector<16x1xf32>
    %174 = vector.broadcast %173 : vector<16x1xf32> to vector<16x32xf32>
    %175 = arith.subf %165, %174 : vector<16x32xf32>
    %176 = arith.mulf %175, %175 : vector<16x32xf32>
    %cst_64 = arith.constant dense<0.000000e+00> : vector<16xf32>
    %177 = vector.multi_reduction <add>, %176, %cst_64 [1] : vector<16x32xf32> to vector<16xf32>
    %178 = vector.shape_cast %177 : vector<16xf32> to vector<16x1xf32>
    %cst_65 = arith.constant 3.200000e+01 : f32
    %179 = vector.broadcast %cst_65 : f32 to vector<16x1xf32>
    %180 = arith.divf %178, %179 : vector<16x1xf32>
    %cst_66 = arith.constant 9.99999974E-6 : f32
    %181 = vector.broadcast %cst_66 : f32 to vector<16x1xf32>
    %182 = arith.addf %180, %181 : vector<16x1xf32>
    %183 = math.rsqrt %182 : vector<16x1xf32>
    %184 = vector.broadcast %183 : vector<16x1xf32> to vector<16x32xf32>
    %185 = arith.mulf %175, %184 : vector<16x32xf32>
    %186 = vector.broadcast %167 : vector<1x32xf32> to vector<16x32xf32>
    %187 = arith.mulf %185, %186 : vector<16x32xf32>
    %188 = vector.broadcast %169 : vector<1x32xf32> to vector<16x32xf32>
    %189 = arith.addf %187, %188 : vector<16x32xf32>
    %c0_67 = arith.constant 0 : index
    %c0_68 = arith.constant 0 : index
    %c0_69 = arith.constant 0 : index
    %190 = vector.load %arg9[%c0_67, %c0_68, %c0_69] : memref<2x32x64xf32, #tpu.memory_space<vmem>>, vector<1x32x64xf32>
    %191 = vector.shape_cast %190 : vector<1x32x64xf32> to vector<32x64xf32>
    %cst_70 = arith.constant dense<0.000000e+00> : vector<16x64xf32>
    %192 = tpu.matmul %189, %191, %cst_70 {dimension_numbers = #tpu.dot_dimension_numbers<[1], [0], [0], [1], [0, 0, 1, 1], [], []>} : vector<16x32xf32>, vector<32x64xf32>, vector<16x64xf32> -> vector<16x64xf32>
    %c0_71 = arith.constant 0 : index
    %c0_72 = arith.constant 0 : index
    %c0_73 = arith.constant 0 : index
    %193 = vector.load %arg10[%c0_71, %c0_72, %c0_73] : memref<2x1x64xf32, #tpu.memory_space<vmem>>, vector<1x1x64xf32>
    %194 = vector.shape_cast %193 : vector<1x1x64xf32> to vector<1x64xf32>
    %195 = vector.broadcast %194 : vector<1x64xf32> to vector<16x64xf32>
    %196 = arith.addf %192, %195 : vector<16x64xf32>
    %197 = arith.mulf %196, %196 : vector<16x64xf32>
    %198 = arith.mulf %196, %197 : vector<16x64xf32>
    %cst_74 = arith.constant 4.471500e-02 : f32
    %199 = vector.broadcast %cst_74 : f32 to vector<16x64xf32>
    %200 = arith.mulf %199, %198 : vector<16x64xf32>
    %201 = arith.addf %196, %200 : vector<16x64xf32>
    %cst_75 = arith.constant 0.797884583 : f32
    %202 = vector.broadcast %cst_75 : f32 to vector<16x64xf32>
    %203 = arith.mulf %202, %201 : vector<16x64xf32>
    %204 = math.tanh %203 : vector<16x64xf32>
    %cst_76 = arith.constant 1.000000e+00 : f32
    %205 = vector.broadcast %cst_76 : f32 to vector<16x64xf32>
    %206 = arith.addf %205, %204 : vector<16x64xf32>
    %cst_77 = arith.constant 5.000000e-01 : f32
    %207 = vector.broadcast %cst_77 : f32 to vector<16x64xf32>
    %208 = arith.mulf %207, %206 : vector<16x64xf32>
    %209 = arith.mulf %196, %208 : vector<16x64xf32>
    %c0_78 = arith.constant 0 : index
    %c0_79 = arith.constant 0 : index
    %c0_80 = arith.constant 0 : index
    %210 = vector.load %arg11[%c0_78, %c0_79, %c0_80] : memref<2x64x32xf32, #tpu.memory_space<vmem>>, vector<1x64x32xf32>
    %211 = vector.shape_cast %210 : vector<1x64x32xf32> to vector<64x32xf32>
    %cst_81 = arith.constant dense<0.000000e+00> : vector<16x32xf32>
    %212 = tpu.matmul %209, %211, %cst_81 {dimension_numbers = #tpu.dot_dimension_numbers<[1], [0], [0], [1], [0, 0, 1, 1], [], []>} : vector<16x64xf32>, vector<64x32xf32>, vector<16x32xf32> -> vector<16x32xf32>
    %c0_82 = arith.constant 0 : index
    %c0_83 = arith.constant 0 : index
    %c0_84 = arith.constant 0 : index
    %213 = vector.load %arg12[%c0_82, %c0_83, %c0_84] : memref<2x1x32xf32, #tpu.memory_space<vmem>>, vector<1x1x32xf32>
    %214 = vector.shape_cast %213 : vector<1x1x32xf32> to vector<1x32xf32>
    %215 = vector.broadcast %214 : vector<1x32xf32> to vector<16x32xf32>
    %216 = arith.addf %212, %215 : vector<16x32xf32>
    %217 = arith.addf %216, %189 : vector<16x32xf32>
    %c0_85 = arith.constant 0 : index
    %c0_86 = arith.constant 0 : index
    %c0_87 = arith.constant 0 : index
    %218 = vector.load %arg13[%c0_85, %c0_86, %c0_87] : memref<2x1x32xf32, #tpu.memory_space<vmem>>, vector<1x1x32xf32>
    %219 = vector.shape_cast %218 : vector<1x1x32xf32> to vector<1x32xf32>
    %c0_88 = arith.constant 0 : index
    %c0_89 = arith.constant 0 : index
    %c0_90 = arith.constant 0 : index
    %220 = vector.load %arg14[%c0_88, %c0_89, %c0_90] : memref<2x1x32xf32, #tpu.memory_space<vmem>>, vector<1x1x32xf32>
    %221 = vector.shape_cast %220 : vector<1x1x32xf32> to vector<1x32xf32>
    %cst_91 = arith.constant dense<0.000000e+00> : vector<16xf32>
    %222 = vector.multi_reduction <add>, %217, %cst_91 [1] : vector<16x32xf32> to vector<16xf32>
    %223 = vector.shape_cast %222 : vector<16xf32> to vector<16x1xf32>
    %cst_92 = arith.constant 3.200000e+01 : f32
    %224 = vector.broadcast %cst_92 : f32 to vector<16x1xf32>
    %225 = arith.divf %223, %224 : vector<16x1xf32>
    %226 = vector.broadcast %225 : vector<16x1xf32> to vector<16x32xf32>
    %227 = arith.subf %217, %226 : vector<16x32xf32>
    %228 = arith.mulf %227, %227 : vector<16x32xf32>
    %cst_93 = arith.constant dense<0.000000e+00> : vector<16xf32>
    %229 = vector.multi_reduction <add>, %228, %cst_93 [1] : vector<16x32xf32> to vector<16xf32>
    %230 = vector.shape_cast %229 : vector<16xf32> to vector<16x1xf32>
    %cst_94 = arith.constant 3.200000e+01 : f32
    %231 = vector.broadcast %cst_94 : f32 to vector<16x1xf32>
    %232 = arith.divf %230, %231 : vector<16x1xf32>
    %cst_95 = arith.constant 9.99999974E-6 : f32
    %233 = vector.broadcast %cst_95 : f32 to vector<16x1xf32>
    %234 = arith.addf %232, %233 : vector<16x1xf32>
    %235 = math.rsqrt %234 : vector<16x1xf32>
    %236 = vector.broadcast %235 : vector<16x1xf32> to vector<16x32xf32>
    %237 = arith.mulf %227, %236 : vector<16x32xf32>
    %238 = vector.broadcast %219 : vector<1x32xf32> to vector<16x32xf32>
    %239 = arith.mulf %237, %238 : vector<16x32xf32>
    %240 = vector.broadcast %221 : vector<1x32xf32> to vector<16x32xf32>
    %241 = arith.addf %239, %240 : vector<16x32xf32>
    %c1 = arith.constant 1 : index
    %c0_96 = arith.constant 0 : index
    %c0_97 = arith.constant 0 : index
    %242 = vector.load %arg3[%c1, %c0_96, %c0_97] : memref<2x32x96xf32, #tpu.memory_space<vmem>>, vector<1x32x96xf32>
    %243 = vector.shape_cast %242 : vector<1x32x96xf32> to vector<32x96xf32>
    %cst_98 = arith.constant dense<0.000000e+00> : vector<16x96xf32>
    %244 = tpu.matmul %241, %243, %cst_98 {dimension_numbers = #tpu.dot_dimension_numbers<[1], [0], [0], [1], [0, 0, 1, 1], [], []>} : vector<16x32xf32>, vector<32x96xf32>, vector<16x96xf32> -> vector<16x96xf32>
    %c1_99 = arith.constant 1 : index
    %c0_100 = arith.constant 0 : index
    %c0_101 = arith.constant 0 : index
    %245 = vector.load %arg4[%c1_99, %c0_100, %c0_101] : memref<2x1x96xf32, #tpu.memory_space<vmem>>, vector<1x1x96xf32>
    %246 = vector.shape_cast %245 : vector<1x1x96xf32> to vector<1x96xf32>
    %247 = vector.broadcast %246 : vector<1x96xf32> to vector<16x96xf32>
    %248 = arith.addf %244, %247 : vector<16x96xf32>
    %249 = vector.extract_strided_slice %248 {offsets = [0, 0], sizes = [16, 32], strides = [1, 1]} : vector<16x96xf32> to vector<16x32xf32>
    %cst_102 = arith.constant 0.353553385 : f32
    %250 = vector.broadcast %cst_102 : f32 to vector<16x32xf32>
    %251 = arith.mulf %249, %250 : vector<16x32xf32>
    %252 = vector.extract_strided_slice %248 {offsets = [0, 32], sizes = [16, 32], strides = [1, 1]} : vector<16x96xf32> to vector<16x32xf32>
    %253 = vector.extract_strided_slice %248 {offsets = [0, 64], sizes = [16, 32], strides = [1, 1]} : vector<16x96xf32> to vector<16x32xf32>
    %254 = vector.extract_strided_slice %251 {offsets = [0, 0], sizes = [8, 8], strides = [1, 1]} : vector<16x32xf32> to vector<8x8xf32>
    %255 = vector.extract_strided_slice %252 {offsets = [0, 0], sizes = [8, 8], strides = [1, 1]} : vector<16x32xf32> to vector<8x8xf32>
    %256 = vector.extract_strided_slice %253 {offsets = [0, 0], sizes = [8, 8], strides = [1, 1]} : vector<16x32xf32> to vector<8x8xf32>
    %cst_103 = arith.constant dense<0.000000e+00> : vector<8x8xf32>
    %257 = tpu.matmul %254, %255, %cst_103 {dimension_numbers = #tpu.dot_dimension_numbers<[1], [1], [0], [0], [0, 0, 1, 0], [], []>} : vector<8x8xf32>, vector<8x8xf32>, vector<8x8xf32> -> vector<8x8xf32>
    %cst_104 = arith.constant dense<0xFF800000> : vector<8xf32>
    %258 = vector.multi_reduction <maximumf>, %257, %cst_104 [1] : vector<8x8xf32> to vector<8xf32>
    %259 = vector.shape_cast %258 : vector<8xf32> to vector<8x1xf32>
    %260 = vector.broadcast %259 : vector<8x1xf32> to vector<8x8xf32>
    %261 = arith.subf %257, %260 : vector<8x8xf32>
    %262 = math.exp %261 : vector<8x8xf32>
    %cst_105 = arith.constant dense<0.000000e+00> : vector<8xf32>
    %263 = vector.multi_reduction <add>, %262, %cst_105 [1] : vector<8x8xf32> to vector<8xf32>
    %264 = vector.shape_cast %263 : vector<8xf32> to vector<8x1xf32>
    %265 = tpu.reciprocal %264 {approx = true} : vector<8x1xf32> -> vector<8x1xf32>
    %266 = vector.broadcast %265 : vector<8x1xf32> to vector<8x8xf32>
    %267 = arith.mulf %262, %266 : vector<8x8xf32>
    %cst_106 = arith.constant dense<0.000000e+00> : vector<8x8xf32>
    %268 = tpu.matmul %267, %256, %cst_106 {dimension_numbers = #tpu.dot_dimension_numbers<[1], [0], [0], [1], [0, 0, 1, 1], [], []>} : vector<8x8xf32>, vector<8x8xf32>, vector<8x8xf32> -> vector<8x8xf32>
    %269 = vector.extract_strided_slice %251 {offsets = [0, 8], sizes = [8, 8], strides = [1, 1]} : vector<16x32xf32> to vector<8x8xf32>
    %270 = vector.extract_strided_slice %252 {offsets = [0, 8], sizes = [8, 8], strides = [1, 1]} : vector<16x32xf32> to vector<8x8xf32>
    %271 = vector.extract_strided_slice %253 {offsets = [0, 8], sizes = [8, 8], strides = [1, 1]} : vector<16x32xf32> to vector<8x8xf32>
    %cst_107 = arith.constant dense<0.000000e+00> : vector<8x8xf32>
    %272 = tpu.matmul %269, %270, %cst_107 {dimension_numbers = #tpu.dot_dimension_numbers<[1], [1], [0], [0], [0, 0, 1, 0], [], []>} : vector<8x8xf32>, vector<8x8xf32>, vector<8x8xf32> -> vector<8x8xf32>
    %cst_108 = arith.constant dense<0xFF800000> : vector<8xf32>
    %273 = vector.multi_reduction <maximumf>, %272, %cst_108 [1] : vector<8x8xf32> to vector<8xf32>
    %274 = vector.shape_cast %273 : vector<8xf32> to vector<8x1xf32>
    %275 = vector.broadcast %274 : vector<8x1xf32> to vector<8x8xf32>
    %276 = arith.subf %272, %275 : vector<8x8xf32>
    %277 = math.exp %276 : vector<8x8xf32>
    %cst_109 = arith.constant dense<0.000000e+00> : vector<8xf32>
    %278 = vector.multi_reduction <add>, %277, %cst_109 [1] : vector<8x8xf32> to vector<8xf32>
    %279 = vector.shape_cast %278 : vector<8xf32> to vector<8x1xf32>
    %280 = tpu.reciprocal %279 {approx = true} : vector<8x1xf32> -> vector<8x1xf32>
    %281 = vector.broadcast %280 : vector<8x1xf32> to vector<8x8xf32>
    %282 = arith.mulf %277, %281 : vector<8x8xf32>
    %cst_110 = arith.constant dense<0.000000e+00> : vector<8x8xf32>
    %283 = tpu.matmul %282, %271, %cst_110 {dimension_numbers = #tpu.dot_dimension_numbers<[1], [0], [0], [1], [0, 0, 1, 1], [], []>} : vector<8x8xf32>, vector<8x8xf32>, vector<8x8xf32> -> vector<8x8xf32>
    %284 = vector.extract_strided_slice %251 {offsets = [0, 16], sizes = [8, 8], strides = [1, 1]} : vector<16x32xf32> to vector<8x8xf32>
    %285 = vector.extract_strided_slice %252 {offsets = [0, 16], sizes = [8, 8], strides = [1, 1]} : vector<16x32xf32> to vector<8x8xf32>
    %286 = vector.extract_strided_slice %253 {offsets = [0, 16], sizes = [8, 8], strides = [1, 1]} : vector<16x32xf32> to vector<8x8xf32>
    %cst_111 = arith.constant dense<0.000000e+00> : vector<8x8xf32>
    %287 = tpu.matmul %284, %285, %cst_111 {dimension_numbers = #tpu.dot_dimension_numbers<[1], [1], [0], [0], [0, 0, 1, 0], [], []>} : vector<8x8xf32>, vector<8x8xf32>, vector<8x8xf32> -> vector<8x8xf32>
    %cst_112 = arith.constant dense<0xFF800000> : vector<8xf32>
    %288 = vector.multi_reduction <maximumf>, %287, %cst_112 [1] : vector<8x8xf32> to vector<8xf32>
    %289 = vector.shape_cast %288 : vector<8xf32> to vector<8x1xf32>
    %290 = vector.broadcast %289 : vector<8x1xf32> to vector<8x8xf32>
    %291 = arith.subf %287, %290 : vector<8x8xf32>
    %292 = math.exp %291 : vector<8x8xf32>
    %cst_113 = arith.constant dense<0.000000e+00> : vector<8xf32>
    %293 = vector.multi_reduction <add>, %292, %cst_113 [1] : vector<8x8xf32> to vector<8xf32>
    %294 = vector.shape_cast %293 : vector<8xf32> to vector<8x1xf32>
    %295 = tpu.reciprocal %294 {approx = true} : vector<8x1xf32> -> vector<8x1xf32>
    %296 = vector.broadcast %295 : vector<8x1xf32> to vector<8x8xf32>
    %297 = arith.mulf %292, %296 : vector<8x8xf32>
    %cst_114 = arith.constant dense<0.000000e+00> : vector<8x8xf32>
    %298 = tpu.matmul %297, %286, %cst_114 {dimension_numbers = #tpu.dot_dimension_numbers<[1], [0], [0], [1], [0, 0, 1, 1], [], []>} : vector<8x8xf32>, vector<8x8xf32>, vector<8x8xf32> -> vector<8x8xf32>
    %299 = vector.extract_strided_slice %251 {offsets = [0, 24], sizes = [8, 8], strides = [1, 1]} : vector<16x32xf32> to vector<8x8xf32>
    %300 = vector.extract_strided_slice %252 {offsets = [0, 24], sizes = [8, 8], strides = [1, 1]} : vector<16x32xf32> to vector<8x8xf32>
    %301 = vector.extract_strided_slice %253 {offsets = [0, 24], sizes = [8, 8], strides = [1, 1]} : vector<16x32xf32> to vector<8x8xf32>
    %cst_115 = arith.constant dense<0.000000e+00> : vector<8x8xf32>
    %302 = tpu.matmul %299, %300, %cst_115 {dimension_numbers = #tpu.dot_dimension_numbers<[1], [1], [0], [0], [0, 0, 1, 0], [], []>} : vector<8x8xf32>, vector<8x8xf32>, vector<8x8xf32> -> vector<8x8xf32>
    %cst_116 = arith.constant dense<0xFF800000> : vector<8xf32>
    %303 = vector.multi_reduction <maximumf>, %302, %cst_116 [1] : vector<8x8xf32> to vector<8xf32>
    %304 = vector.shape_cast %303 : vector<8xf32> to vector<8x1xf32>
    %305 = vector.broadcast %304 : vector<8x1xf32> to vector<8x8xf32>
    %306 = arith.subf %302, %305 : vector<8x8xf32>
    %307 = math.exp %306 : vector<8x8xf32>
    %cst_117 = arith.constant dense<0.000000e+00> : vector<8xf32>
    %308 = vector.multi_reduction <add>, %307, %cst_117 [1] : vector<8x8xf32> to vector<8xf32>
    %309 = vector.shape_cast %308 : vector<8xf32> to vector<8x1xf32>
    %310 = tpu.reciprocal %309 {approx = true} : vector<8x1xf32> -> vector<8x1xf32>
    %311 = vector.broadcast %310 : vector<8x1xf32> to vector<8x8xf32>
    %312 = arith.mulf %307, %311 : vector<8x8xf32>
    %cst_118 = arith.constant dense<0.000000e+00> : vector<8x8xf32>
    %313 = tpu.matmul %312, %301, %cst_118 {dimension_numbers = #tpu.dot_dimension_numbers<[1], [0], [0], [1], [0, 0, 1, 1], [], []>} : vector<8x8xf32>, vector<8x8xf32>, vector<8x8xf32> -> vector<8x8xf32>
    %314 = tpu.concatenate %268, %283, %298, %313 in 1 : vector<8x8xf32>, vector<8x8xf32>, vector<8x8xf32>, vector<8x8xf32> -> vector<8x32xf32>
    %315 = vector.extract_strided_slice %251 {offsets = [8, 0], sizes = [8, 8], strides = [1, 1]} : vector<16x32xf32> to vector<8x8xf32>
    %316 = vector.extract_strided_slice %252 {offsets = [8, 0], sizes = [8, 8], strides = [1, 1]} : vector<16x32xf32> to vector<8x8xf32>
    %317 = vector.extract_strided_slice %253 {offsets = [8, 0], sizes = [8, 8], strides = [1, 1]} : vector<16x32xf32> to vector<8x8xf32>
    %cst_119 = arith.constant dense<0.000000e+00> : vector<8x8xf32>
    %318 = tpu.matmul %315, %316, %cst_119 {dimension_numbers = #tpu.dot_dimension_numbers<[1], [1], [0], [0], [0, 0, 1, 0], [], []>} : vector<8x8xf32>, vector<8x8xf32>, vector<8x8xf32> -> vector<8x8xf32>
    %cst_120 = arith.constant dense<0xFF800000> : vector<8xf32>
    %319 = vector.multi_reduction <maximumf>, %318, %cst_120 [1] : vector<8x8xf32> to vector<8xf32>
    %320 = vector.shape_cast %319 : vector<8xf32> to vector<8x1xf32>
    %321 = vector.broadcast %320 : vector<8x1xf32> to vector<8x8xf32>
    %322 = arith.subf %318, %321 : vector<8x8xf32>
    %323 = math.exp %322 : vector<8x8xf32>
    %cst_121 = arith.constant dense<0.000000e+00> : vector<8xf32>
    %324 = vector.multi_reduction <add>, %323, %cst_121 [1] : vector<8x8xf32> to vector<8xf32>
    %325 = vector.shape_cast %324 : vector<8xf32> to vector<8x1xf32>
    %326 = tpu.reciprocal %325 {approx = true} : vector<8x1xf32> -> vector<8x1xf32>
    %327 = vector.broadcast %326 : vector<8x1xf32> to vector<8x8xf32>
    %328 = arith.mulf %323, %327 : vector<8x8xf32>
    %cst_122 = arith.constant dense<0.000000e+00> : vector<8x8xf32>
    %329 = tpu.matmul %328, %317, %cst_122 {dimension_numbers = #tpu.dot_dimension_numbers<[1], [0], [0], [1], [0, 0, 1, 1], [], []>} : vector<8x8xf32>, vector<8x8xf32>, vector<8x8xf32> -> vector<8x8xf32>
    %330 = vector.extract_strided_slice %251 {offsets = [8, 8], sizes = [8, 8], strides = [1, 1]} : vector<16x32xf32> to vector<8x8xf32>
    %331 = vector.extract_strided_slice %252 {offsets = [8, 8], sizes = [8, 8], strides = [1, 1]} : vector<16x32xf32> to vector<8x8xf32>
    %332 = vector.extract_strided_slice %253 {offsets = [8, 8], sizes = [8, 8], strides = [1, 1]} : vector<16x32xf32> to vector<8x8xf32>
    %cst_123 = arith.constant dense<0.000000e+00> : vector<8x8xf32>
    %333 = tpu.matmul %330, %331, %cst_123 {dimension_numbers = #tpu.dot_dimension_numbers<[1], [1], [0], [0], [0, 0, 1, 0], [], []>} : vector<8x8xf32>, vector<8x8xf32>, vector<8x8xf32> -> vector<8x8xf32>
    %cst_124 = arith.constant dense<0xFF800000> : vector<8xf32>
    %334 = vector.multi_reduction <maximumf>, %333, %cst_124 [1] : vector<8x8xf32> to vector<8xf32>
    %335 = vector.shape_cast %334 : vector<8xf32> to vector<8x1xf32>
    %336 = vector.broadcast %335 : vector<8x1xf32> to vector<8x8xf32>
    %337 = arith.subf %333, %336 : vector<8x8xf32>
    %338 = math.exp %337 : vector<8x8xf32>
    %cst_125 = arith.constant dense<0.000000e+00> : vector<8xf32>
    %339 = vector.multi_reduction <add>, %338, %cst_125 [1] : vector<8x8xf32> to vector<8xf32>
    %340 = vector.shape_cast %339 : vector<8xf32> to vector<8x1xf32>
    %341 = tpu.reciprocal %340 {approx = true} : vector<8x1xf32> -> vector<8x1xf32>
    %342 = vector.broadcast %341 : vector<8x1xf32> to vector<8x8xf32>
    %343 = arith.mulf %338, %342 : vector<8x8xf32>
    %cst_126 = arith.constant dense<0.000000e+00> : vector<8x8xf32>
    %344 = tpu.matmul %343, %332, %cst_126 {dimension_numbers = #tpu.dot_dimension_numbers<[1], [0], [0], [1], [0, 0, 1, 1], [], []>} : vector<8x8xf32>, vector<8x8xf32>, vector<8x8xf32> -> vector<8x8xf32>
    %345 = vector.extract_strided_slice %251 {offsets = [8, 16], sizes = [8, 8], strides = [1, 1]} : vector<16x32xf32> to vector<8x8xf32>
    %346 = vector.extract_strided_slice %252 {offsets = [8, 16], sizes = [8, 8], strides = [1, 1]} : vector<16x32xf32> to vector<8x8xf32>
    %347 = vector.extract_strided_slice %253 {offsets = [8, 16], sizes = [8, 8], strides = [1, 1]} : vector<16x32xf32> to vector<8x8xf32>
    %cst_127 = arith.constant dense<0.000000e+00> : vector<8x8xf32>
    %348 = tpu.matmul %345, %346, %cst_127 {dimension_numbers = #tpu.dot_dimension_numbers<[1], [1], [0], [0], [0, 0, 1, 0], [], []>} : vector<8x8xf32>, vector<8x8xf32>, vector<8x8xf32> -> vector<8x8xf32>
    %cst_128 = arith.constant dense<0xFF800000> : vector<8xf32>
    %349 = vector.multi_reduction <maximumf>, %348, %cst_128 [1] : vector<8x8xf32> to vector<8xf32>
    %350 = vector.shape_cast %349 : vector<8xf32> to vector<8x1xf32>
    %351 = vector.broadcast %350 : vector<8x1xf32> to vector<8x8xf32>
    %352 = arith.subf %348, %351 : vector<8x8xf32>
    %353 = math.exp %352 : vector<8x8xf32>
    %cst_129 = arith.constant dense<0.000000e+00> : vector<8xf32>
    %354 = vector.multi_reduction <add>, %353, %cst_129 [1] : vector<8x8xf32> to vector<8xf32>
    %355 = vector.shape_cast %354 : vector<8xf32> to vector<8x1xf32>
    %356 = tpu.reciprocal %355 {approx = true} : vector<8x1xf32> -> vector<8x1xf32>
    %357 = vector.broadcast %356 : vector<8x1xf32> to vector<8x8xf32>
    %358 = arith.mulf %353, %357 : vector<8x8xf32>
    %cst_130 = arith.constant dense<0.000000e+00> : vector<8x8xf32>
    %359 = tpu.matmul %358, %347, %cst_130 {dimension_numbers = #tpu.dot_dimension_numbers<[1], [0], [0], [1], [0, 0, 1, 1], [], []>} : vector<8x8xf32>, vector<8x8xf32>, vector<8x8xf32> -> vector<8x8xf32>
    %360 = vector.extract_strided_slice %251 {offsets = [8, 24], sizes = [8, 8], strides = [1, 1]} : vector<16x32xf32> to vector<8x8xf32>
    %361 = vector.extract_strided_slice %252 {offsets = [8, 24], sizes = [8, 8], strides = [1, 1]} : vector<16x32xf32> to vector<8x8xf32>
    %362 = vector.extract_strided_slice %253 {offsets = [8, 24], sizes = [8, 8], strides = [1, 1]} : vector<16x32xf32> to vector<8x8xf32>
    %cst_131 = arith.constant dense<0.000000e+00> : vector<8x8xf32>
    %363 = tpu.matmul %360, %361, %cst_131 {dimension_numbers = #tpu.dot_dimension_numbers<[1], [1], [0], [0], [0, 0, 1, 0], [], []>} : vector<8x8xf32>, vector<8x8xf32>, vector<8x8xf32> -> vector<8x8xf32>
    %cst_132 = arith.constant dense<0xFF800000> : vector<8xf32>
    %364 = vector.multi_reduction <maximumf>, %363, %cst_132 [1] : vector<8x8xf32> to vector<8xf32>
    %365 = vector.shape_cast %364 : vector<8xf32> to vector<8x1xf32>
    %366 = vector.broadcast %365 : vector<8x1xf32> to vector<8x8xf32>
    %367 = arith.subf %363, %366 : vector<8x8xf32>
    %368 = math.exp %367 : vector<8x8xf32>
    %cst_133 = arith.constant dense<0.000000e+00> : vector<8xf32>
    %369 = vector.multi_reduction <add>, %368, %cst_133 [1] : vector<8x8xf32> to vector<8xf32>
    %370 = vector.shape_cast %369 : vector<8xf32> to vector<8x1xf32>
    %371 = tpu.reciprocal %370 {approx = true} : vector<8x1xf32> -> vector<8x1xf32>
    %372 = vector.broadcast %371 : vector<8x1xf32> to vector<8x8xf32>
    %373 = arith.mulf %368, %372 : vector<8x8xf32>
    %cst_134 = arith.constant dense<0.000000e+00> : vector<8x8xf32>
    %374 = tpu.matmul %373, %362, %cst_134 {dimension_numbers = #tpu.dot_dimension_numbers<[1], [0], [0], [1], [0, 0, 1, 1], [], []>} : vector<8x8xf32>, vector<8x8xf32>, vector<8x8xf32> -> vector<8x8xf32>
    %375 = tpu.concatenate %329, %344, %359, %374 in 1 : vector<8x8xf32>, vector<8x8xf32>, vector<8x8xf32>, vector<8x8xf32> -> vector<8x32xf32>
    %376 = tpu.concatenate %314, %375 in 0 : vector<8x32xf32>, vector<8x32xf32> -> vector<16x32xf32>
    %c1_135 = arith.constant 1 : index
    %c0_136 = arith.constant 0 : index
    %c0_137 = arith.constant 0 : index
    %377 = vector.load %arg5[%c1_135, %c0_136, %c0_137] : memref<2x32x32xf32, #tpu.memory_space<vmem>>, vector<1x32x32xf32>
    %378 = vector.shape_cast %377 : vector<1x32x32xf32> to vector<32x32xf32>
    %cst_138 = arith.constant dense<0.000000e+00> : vector<16x32xf32>
    %379 = tpu.matmul %376, %378, %cst_138 {dimension_numbers = #tpu.dot_dimension_numbers<[1], [0], [0], [1], [0, 0, 1, 1], [], []>} : vector<16x32xf32>, vector<32x32xf32>, vector<16x32xf32> -> vector<16x32xf32>
    %c1_139 = arith.constant 1 : index
    %c0_140 = arith.constant 0 : index
    %c0_141 = arith.constant 0 : index
    %380 = vector.load %arg6[%c1_139, %c0_140, %c0_141] : memref<2x1x32xf32, #tpu.memory_space<vmem>>, vector<1x1x32xf32>
    %381 = vector.shape_cast %380 : vector<1x1x32xf32> to vector<1x32xf32>
    %382 = vector.broadcast %381 : vector<1x32xf32> to vector<16x32xf32>
    %383 = arith.addf %379, %382 : vector<16x32xf32>
    %384 = arith.addf %383, %241 : vector<16x32xf32>
    %c1_142 = arith.constant 1 : index
    %c0_143 = arith.constant 0 : index
    %c0_144 = arith.constant 0 : index
    %385 = vector.load %arg7[%c1_142, %c0_143, %c0_144] : memref<2x1x32xf32, #tpu.memory_space<vmem>>, vector<1x1x32xf32>
    %386 = vector.shape_cast %385 : vector<1x1x32xf32> to vector<1x32xf32>
    %c1_145 = arith.constant 1 : index
    %c0_146 = arith.constant 0 : index
    %c0_147 = arith.constant 0 : index
    %387 = vector.load %arg8[%c1_145, %c0_146, %c0_147] : memref<2x1x32xf32, #tpu.memory_space<vmem>>, vector<1x1x32xf32>
    %388 = vector.shape_cast %387 : vector<1x1x32xf32> to vector<1x32xf32>
    %cst_148 = arith.constant dense<0.000000e+00> : vector<16xf32>
    %389 = vector.multi_reduction <add>, %384, %cst_148 [1] : vector<16x32xf32> to vector<16xf32>
    %390 = vector.shape_cast %389 : vector<16xf32> to vector<16x1xf32>
    %cst_149 = arith.constant 3.200000e+01 : f32
    %391 = vector.broadcast %cst_149 : f32 to vector<16x1xf32>
    %392 = arith.divf %390, %391 : vector<16x1xf32>
    %393 = vector.broadcast %392 : vector<16x1xf32> to vector<16x32xf32>
    %394 = arith.subf %384, %393 : vector<16x32xf32>
    %395 = arith.mulf %394, %394 : vector<16x32xf32>
    %cst_150 = arith.constant dense<0.000000e+00> : vector<16xf32>
    %396 = vector.multi_reduction <add>, %395, %cst_150 [1] : vector<16x32xf32> to vector<16xf32>
    %397 = vector.shape_cast %396 : vector<16xf32> to vector<16x1xf32>
    %cst_151 = arith.constant 3.200000e+01 : f32
    %398 = vector.broadcast %cst_151 : f32 to vector<16x1xf32>
    %399 = arith.divf %397, %398 : vector<16x1xf32>
    %cst_152 = arith.constant 9.99999974E-6 : f32
    %400 = vector.broadcast %cst_152 : f32 to vector<16x1xf32>
    %401 = arith.addf %399, %400 : vector<16x1xf32>
    %402 = math.rsqrt %401 : vector<16x1xf32>
    %403 = vector.broadcast %402 : vector<16x1xf32> to vector<16x32xf32>
    %404 = arith.mulf %394, %403 : vector<16x32xf32>
    %405 = vector.broadcast %386 : vector<1x32xf32> to vector<16x32xf32>
    %406 = arith.mulf %404, %405 : vector<16x32xf32>
    %407 = vector.broadcast %388 : vector<1x32xf32> to vector<16x32xf32>
    %408 = arith.addf %406, %407 : vector<16x32xf32>
    %c1_153 = arith.constant 1 : index
    %c0_154 = arith.constant 0 : index
    %c0_155 = arith.constant 0 : index
    %409 = vector.load %arg9[%c1_153, %c0_154, %c0_155] : memref<2x32x64xf32, #tpu.memory_space<vmem>>, vector<1x32x64xf32>
    %410 = vector.shape_cast %409 : vector<1x32x64xf32> to vector<32x64xf32>
    %cst_156 = arith.constant dense<0.000000e+00> : vector<16x64xf32>
    %411 = tpu.matmul %408, %410, %cst_156 {dimension_numbers = #tpu.dot_dimension_numbers<[1], [0], [0], [1], [0, 0, 1, 1], [], []>} : vector<16x32xf32>, vector<32x64xf32>, vector<16x64xf32> -> vector<16x64xf32>
    %c1_157 = arith.constant 1 : index
    %c0_158 = arith.constant 0 : index
    %c0_159 = arith.constant 0 : index
    %412 = vector.load %arg10[%c1_157, %c0_158, %c0_159] : memref<2x1x64xf32, #tpu.memory_space<vmem>>, vector<1x1x64xf32>
    %413 = vector.shape_cast %412 : vector<1x1x64xf32> to vector<1x64xf32>
    %414 = vector.broadcast %413 : vector<1x64xf32> to vector<16x64xf32>
    %415 = arith.addf %411, %414 : vector<16x64xf32>
    %416 = arith.mulf %415, %415 : vector<16x64xf32>
    %417 = arith.mulf %415, %416 : vector<16x64xf32>
    %cst_160 = arith.constant 4.471500e-02 : f32
    %418 = vector.broadcast %cst_160 : f32 to vector<16x64xf32>
    %419 = arith.mulf %418, %417 : vector<16x64xf32>
    %420 = arith.addf %415, %419 : vector<16x64xf32>
    %cst_161 = arith.constant 0.797884583 : f32
    %421 = vector.broadcast %cst_161 : f32 to vector<16x64xf32>
    %422 = arith.mulf %421, %420 : vector<16x64xf32>
    %423 = math.tanh %422 : vector<16x64xf32>
    %cst_162 = arith.constant 1.000000e+00 : f32
    %424 = vector.broadcast %cst_162 : f32 to vector<16x64xf32>
    %425 = arith.addf %424, %423 : vector<16x64xf32>
    %cst_163 = arith.constant 5.000000e-01 : f32
    %426 = vector.broadcast %cst_163 : f32 to vector<16x64xf32>
    %427 = arith.mulf %426, %425 : vector<16x64xf32>
    %428 = arith.mulf %415, %427 : vector<16x64xf32>
    %c1_164 = arith.constant 1 : index
    %c0_165 = arith.constant 0 : index
    %c0_166 = arith.constant 0 : index
    %429 = vector.load %arg11[%c1_164, %c0_165, %c0_166] : memref<2x64x32xf32, #tpu.memory_space<vmem>>, vector<1x64x32xf32>
    %430 = vector.shape_cast %429 : vector<1x64x32xf32> to vector<64x32xf32>
    %cst_167 = arith.constant dense<0.000000e+00> : vector<16x32xf32>
    %431 = tpu.matmul %428, %430, %cst_167 {dimension_numbers = #tpu.dot_dimension_numbers<[1], [0], [0], [1], [0, 0, 1, 1], [], []>} : vector<16x64xf32>, vector<64x32xf32>, vector<16x32xf32> -> vector<16x32xf32>
    %c1_168 = arith.constant 1 : index
    %c0_169 = arith.constant 0 : index
    %c0_170 = arith.constant 0 : index
    %432 = vector.load %arg12[%c1_168, %c0_169, %c0_170] : memref<2x1x32xf32, #tpu.memory_space<vmem>>, vector<1x1x32xf32>
    %433 = vector.shape_cast %432 : vector<1x1x32xf32> to vector<1x32xf32>
    %434 = vector.broadcast %433 : vector<1x32xf32> to vector<16x32xf32>
    %435 = arith.addf %431, %434 : vector<16x32xf32>
    %436 = arith.addf %435, %408 : vector<16x32xf32>
    %c1_171 = arith.constant 1 : index
    %c0_172 = arith.constant 0 : index
    %c0_173 = arith.constant 0 : index
    %437 = vector.load %arg13[%c1_171, %c0_172, %c0_173] : memref<2x1x32xf32, #tpu.memory_space<vmem>>, vector<1x1x32xf32>
    %438 = vector.shape_cast %437 : vector<1x1x32xf32> to vector<1x32xf32>
    %c1_174 = arith.constant 1 : index
    %c0_175 = arith.constant 0 : index
    %c0_176 = arith.constant 0 : index
    %439 = vector.load %arg14[%c1_174, %c0_175, %c0_176] : memref<2x1x32xf32, #tpu.memory_space<vmem>>, vector<1x1x32xf32>
    %440 = vector.shape_cast %439 : vector<1x1x32xf32> to vector<1x32xf32>
    %cst_177 = arith.constant dense<0.000000e+00> : vector<16xf32>
    %441 = vector.multi_reduction <add>, %436, %cst_177 [1] : vector<16x32xf32> to vector<16xf32>
    %442 = vector.shape_cast %441 : vector<16xf32> to vector<16x1xf32>
    %cst_178 = arith.constant 3.200000e+01 : f32
    %443 = vector.broadcast %cst_178 : f32 to vector<16x1xf32>
    %444 = arith.divf %442, %443 : vector<16x1xf32>
    %445 = vector.broadcast %444 : vector<16x1xf32> to vector<16x32xf32>
    %446 = arith.subf %436, %445 : vector<16x32xf32>
    %447 = arith.mulf %446, %446 : vector<16x32xf32>
    %cst_179 = arith.constant dense<0.000000e+00> : vector<16xf32>
    %448 = vector.multi_reduction <add>, %447, %cst_179 [1] : vector<16x32xf32> to vector<16xf32>
    %449 = vector.shape_cast %448 : vector<16xf32> to vector<16x1xf32>
    %cst_180 = arith.constant 3.200000e+01 : f32
    %450 = vector.broadcast %cst_180 : f32 to vector<16x1xf32>
    %451 = arith.divf %449, %450 : vector<16x1xf32>
    %cst_181 = arith.constant 9.99999974E-6 : f32
    %452 = vector.broadcast %cst_181 : f32 to vector<16x1xf32>
    %453 = arith.addf %451, %452 : vector<16x1xf32>
    %454 = math.rsqrt %453 : vector<16x1xf32>
    %455 = vector.broadcast %454 : vector<16x1xf32> to vector<16x32xf32>
    %456 = arith.mulf %446, %455 : vector<16x32xf32>
    %457 = vector.broadcast %438 : vector<1x32xf32> to vector<16x32xf32>
    %458 = arith.mulf %456, %457 : vector<16x32xf32>
    %459 = vector.broadcast %440 : vector<1x32xf32> to vector<16x32xf32>
    %460 = arith.addf %458, %459 : vector<16x32xf32>
    %461 = vector.extract_strided_slice %460 {offsets = [0, 0], sizes = [1, 32], strides = [1, 1]} : vector<16x32xf32> to vector<1x32xf32>
    %462 = vector.extract_strided_slice %460 {offsets = [8, 0], sizes = [1, 32], strides = [1, 1]} : vector<16x32xf32> to vector<1x32xf32>
    %463 = tpu.concatenate %461, %462 in 0 : vector<1x32xf32>, vector<1x32xf32> -> vector<2x32xf32>
    %c0_182 = arith.constant 0 : index
    %c0_183 = arith.constant 0 : index
    %464 = vector.load %arg15[%c0_182, %c0_183] : memref<32x32xf32, #tpu.memory_space<vmem>>, vector<32x32xf32>
    %cst_184 = arith.constant dense<0.000000e+00> : vector<2x32xf32>
    %465 = tpu.matmul %463, %464, %cst_184 {dimension_numbers = #tpu.dot_dimension_numbers<[1], [0], [0], [1], [0, 0, 1, 1], [], []>} : vector<2x32xf32>, vector<32x32xf32>, vector<2x32xf32> -> vector<2x32xf32>
    %c0_185 = arith.constant 0 : index
    %c0_186 = arith.constant 0 : index
    %466 = vector.load %arg16[%c0_185, %c0_186] : memref<1x32xf32, #tpu.memory_space<vmem>>, vector<1x32xf32>
    %467 = vector.broadcast %466 : vector<1x32xf32> to vector<2x32xf32>
    %468 = arith.addf %465, %467 : vector<2x32xf32>
    %469 = math.tanh %468 : vector<2x32xf32>
    %c0_187 = arith.constant 0 : index
    %c0_188 = arith.constant 0 : index
    %470 = vector.load %arg17[%c0_187, %c0_188] : memref<32x128xf32, #tpu.memory_space<vmem>>, vector<32x128xf32>
    %cst_189 = arith.constant dense<0.000000e+00> : vector<2x128xf32>
    %471 = tpu.matmul %469, %470, %cst_189 {dimension_numbers = #tpu.dot_dimension_numbers<[1], [0], [0], [1], [0, 0, 1, 1], [], []>} : vector<2x32xf32>, vector<32x128xf32>, vector<2x128xf32> -> vector<2x128xf32>
    %c0_190 = arith.constant 0 : index
    %c0_191 = arith.constant 0 : index
    %472 = vector.load %arg18[%c0_190, %c0_191] : memref<1x128xf32, #tpu.memory_space<vmem>>, vector<1x128xf32>
    %473 = vector.broadcast %472 : vector<1x128xf32> to vector<2x128xf32>
    %474 = arith.addf %471, %473 : vector<2x128xf32>
    %c0_192 = arith.constant 0 : index
    %c0_193 = arith.constant 0 : index
    %475 = vector.load %arg19[%c0_192, %c0_193] : memref<2x128xf32, #tpu.memory_space<vmem>>, vector<2x128xf32>
    tpu.vector_store %arg19[%c0_192, %c0_193], %474 {strides = array<i32>} : memref<2x128xf32, #tpu.memory_space<vmem>>, vector<2x128xf32>,
    return
  }
}

</mosaic_0001>

<bundles_post_ra>
// kernel: chembert_forward.1
= control target key start
LH: loop header
LB: loop body
LE: loop exit
PB: predicated region body
PF: predicated region fallthrough
CT: control target
= control target key end

     0   :  { %s2797_s0 = inlined_call_operand.vmem [shape: f32[16,32], index: 0, kind: input, shape index: {}]   ;;  %s2798_s1 = inlined_call_operand.vmem [shape: f32[1,32], index: 1, kind: input, shape index: {}]   ;;  %s2799_s2 = inlined_call_operand.vmem [shape: f32[1,32], index: 2, kind: input, shape index: {}]   ;;  %s2800_s3 = inlined_call_operand.vmem [shape: f32[2,32,96], index: 3, kind: input, shape index: {}]   ;;  %s2801_s4 = inlined_call_operand.vmem [shape: f32[2,1,96], index: 4, kind: input, shape index: {}]   ;;  %s2802_s5 = inlined_call_operand.vmem [shape: f32[2,32,32], index: 5, kind: input, shape index: {}]   ;;  %s2803_s6 = inlined_call_operand.vmem [shape: f32[2,1,32], index: 6, kind: input, shape index: {}]   ;;  %s2804_s7 = inlined_call_operand.vmem [shape: f32[2,1,32], index: 7, kind: input, shape index: {}]   ;;  %s2805_s8 = inlined_call_operand.vmem [shape: f32[2,1,32], index: 8, kind: input, shape index: {}]   ;;  %s2806_s9 = inlined_call_operand.vmem [shape: f32[2,32,64], index: 9, kind: input, shape index: {}]   ;;  %s2807_s10 = inlined_call_operand.vmem [shape: f32[2,1,64], index: 10, kind: input, shape index: {}]   ;;  %s2808_s11 = inlined_call_operand.vmem [shape: f32[2,64,32], index: 11, kind: input, shape index: {}]   ;;  %s2809_s12 = inlined_call_operand.vmem [shape: f32[2,1,32], index: 12, kind: input, shape index: {}]   ;;  %s2810_s13 = inlined_call_operand.vmem [shape: f32[2,1,32], index: 13, kind: input, shape index: {}]   ;;  %s2811_s14 = inlined_call_operand.vmem [shape: f32[2,1,32], index: 14, kind: input, shape index: {}]   ;;  %s2812_s15 = inlined_call_operand.vmem [shape: f32[32,32], index: 15, kind: input, shape index: {}]   ;;  %s2813_s16 = inlined_call_operand.vmem [shape: f32[1,32], index: 16, kind: input, shape index: {}]   ;;  %s2814_s17 = inlined_call_operand.vmem [shape: f32[32,128], index: 17, kind: input, shape index: {}]   ;;  %s2815_s18 = inlined_call_operand.vmem [shape: f32[1,128], index: 18, kind: input, shape index: {}]   ;;  %s2816_s19 = inlined_call_operand.hbm [shape: f32[2,128], index: 19, kind: output, shape index: {}]  }
   0x1   :  { %2839 = sst [smem:[#allocation5_spill]] %s2797_s0 }
   0x2   :  { %2840 = sst [smem:[#allocation6_spill]] %s2798_s1 }
   0x3   :  { %2841 = sst [smem:[#allocation7_spill]] %s2799_s2 }
   0x4   :  { %2842 = sst [smem:[#allocation8_spill]] %s2800_s3 }
   0x5   :  { %s2843_s20 = sld [smem:[#allocation5_spill]]  ;;  %vm67_vm0 = vcmask 261120  }
   0xb   :  { %v63_v0 = vld [vmem:[%s2843_s20] sm:$0xff]  ;;  %v64_v1 = vld [vmem:[%s2843_s20 + $0x8] sm:$0xff] }
   0xc   :  { %v68_v2 = vsel %vm67_vm0, %v63_v0, 0.0  ;;  %v71_v3 = vsel %vm67_vm0, %v64_v1, 0.0 }
   0xd   :  { %69 = vadd.xlane.f32.xlu0 %v68_v2  ;;  %72 = vadd.xlane.f32.xlu1 %v71_v3 }
   0xe   :  { %24 = vsyncpa [#allocation3], 0  ;;  %v2158_v4 = vmov 32.0   ;;  %s2844_s23 = sld [smem:[#allocation8_spill]]  ;;  %v2319_v53 = vld [vmem:[%s2801_s4] ss:$0 sm:$0xff] }
   0xf   :  { %2036 = vrcp.f32 %v2158_v4  ;;  %s2845_s30 = sld [smem:[#allocation6_spill]]  ;;  %s2159_s24 = smov 96   ;;  %vm171_vm8 = vcmask 64512   ;;  %vm442_vm9 = vcmask 130048   ;;  %vm444_vm10 = vcmask 195584  }
  0x10   :  { %s2846_s1 = sld [smem:[#allocation7_spill]]  ;;  %s2821_s25 = smov 120   ;;  %vm883_vm14 = vcmask 523264  }
  0x11   :  { %s2829_s3 = smov 88   ;;  %s2162_s26 = smov 64  }
  0x12   :  { %s2827_s27 = smov 80   ;;  %s2825_s28 = smov 72  }
  0x13   :  { %s2819_s29 = smov 104   ;;  %s2823_s0 = smov 112  }
  0x14   :  { %v132_v21 = vld [vmem:[%s2844_s23 + $0x18] sm:$0xff]  ;;  %v131_v22 = vld [vmem:[%s2844_s23 + $0x10] sm:$0xff]  ;;  %v130_v23 = vld [vmem:[%s2844_s23 + $0x8] sm:$0xff]  ;;  %s2168_s20 = smov 40   ;;  %s2833_s21 = smov 48  }
  0x15   :  { %v2037_v5 = vpop.eup %2036  ;;  %155 = vmatpush.msra.mxu0 %v132_v21  ;;  %v129_v24 = vld [vmem:[%s2844_s23] sm:$0xff]  ;;  %s2835_s22 = smov 16   ;;  %s2837_s2 = smov 24  }
  0x16   :  { %v75_v6 = vmul.f32 32.0, %v2037_v5  ;;  %vm79_vm1 = vweird.f32 %v2037_v5  ;;  %v2016_v42 = vld [vmem:[%s2845_s30] ss:$0 sm:$0xff]  ;;  %s2167_s30 = smov 56  }
  0x17   :  { %156 = vmatpush.msra.mxu0 %v131_v22  ;;  %v2017_v46 = vld [vmem:[%s2846_s1] ss:$0 sm:$0xff]  ;;  %s2831_s1 = smov 8  }
  0x18   :  { %v76_v7 = vsub.f32 1.0, %v75_v6 }
  0x19   :  { %157 = vmatpush.msra.mxu0 %v130_v23 }
  0x1a   :  { %v77_v8 = vmul.f32 %v2037_v5, %v76_v7 }
  0x1b   :  { %158 = vmatpush.msra.mxu0 %v129_v24 }
  0x1c   :  { %v78_v9 = vadd.f32 %v2037_v5, %v77_v8 }
  0x1e   :  { %v2282_v10 = vsel %vm79_vm1, %v2037_v5, %v78_v9 }
  0x80   :  { %v70_v11 = vpop.xlane.xlu0 %69  ;;  %v73_v12 = vpop.xlane.xlu1 %72 }
  0x81   :  { %v81_v13 = vmul.f32 %v2282_v10, %v70_v11  ;;  %v82_v14 = vmul.f32 %v2282_v10, %v73_v12 }
  0x83   :  { %v83_v15 = vsub.f32 %v63_v0, %v81_v13  ;;  %v84_v16 = vsub.f32 %v64_v1, %v82_v14 }
  0x85   :  { %v85_v17 = vmul.f32 %v83_v15, %v83_v15  ;;  %v86_v18 = vmul.f32 %v84_v16, %v84_v16 }
  0x87   :  { %v87_v19 = vsel %vm67_vm0, %v85_v17, 0.0  ;;  %v90_v20 = vsel %vm67_vm0, %v86_v18, 0.0 }
  0x88   :  { %88 = vadd.xlane.f32.xlu0 %v87_v19  ;;  %91 = vadd.xlane.f32.xlu1 %v90_v20 }
  0xfb   :  { %v89_v25 = vpop.xlane.xlu0 %88  ;;  %v92_v26 = vpop.xlane.xlu1 %91 }
  0xfc   :  { %v93_v27 = vmul.f32 %v89_v25, %v2282_v10  ;;  %v94_v28 = vmul.f32 %v92_v26, %v2282_v10 }
  0xfe   :  { %v95_v29 = vadd.f32 1e-05, %v93_v27  ;;  %v96_v30 = vadd.f32 1e-05, %v94_v28 }
 0x100   :  { %2038 = vrsqrt.f32 %v95_v29  ;;  %vm113_vm2 = vweird.f32 %v96_v30  ;;  %vm103_vm5 = vweird.f32 %v95_v29 }
 0x101   :  { %2040 = vrsqrt.f32 %v96_v30 }
 0x106   :  { %v2039_v31 = vpop.eup %2038 }
 0x107   :  { %v2041_v32 = vpop.eup %2040  ;;  %v98_v33 = vmul.f32 %v2039_v31, %v95_v29  ;;  %vm104_vm4 = vweird.f32 %v2039_v31 }
 0x108   :  { %v108_v34 = vmul.f32 %v2041_v32, %v96_v30  ;;  %vm114_vm3 = vweird.f32 %v2041_v32  ;;  %vm105_vm7 = vmor %vm103_vm5, %vm104_vm4 }
 0x109   :  { %v99_v35 = vmul.f32 %v2039_v31, %v98_v33  ;;  %vm115_vm6 = vmor %vm113_vm2, %vm114_vm3 }
 0x10a   :  { %v109_v36 = vmul.f32 %v2041_v32, %v108_v34 }
 0x10b   :  { %v100_v37 = vmul.f32 0.5, %v99_v35 }
 0x10c   :  { %v110_v38 = vmul.f32 0.5, %v109_v36 }
 0x10d   :  { %v101_v39 = vsub.f32 1.5, %v100_v37 }
 0x10e   :  { %v111_v40 = vsub.f32 1.5, %v110_v38 }
 0x10f   :  { %v102_v41 = vmul.f32 %v2039_v31, %v101_v39 }
 0x110   :  { %v112_v43 = vmul.f32 %v2041_v32, %v111_v40 }
 0x111   :  { %v106_v44 = vsel %vm105_vm7, %v2039_v31, %v102_v41 }
 0x112   :  { %v117_v45 = vmul.f32 %v106_v44, %v83_v15  ;;  %v116_v47 = vsel %vm115_vm6, %v2041_v32, %v112_v43 }
 0x113   :  { %v118_v49 = vmul.f32 %v116_v47, %v84_v16 }
 0x114   :  { %v122_v48 = vmul.f32 %v2016_v42, %v117_v45 }
 0x115   :  { %v123_v51 = vmul.f32 %v2016_v42, %v118_v49 }
 0x116   :  { %v2308_v50 = vadd.f32 %v2017_v46, %v122_v48 }
 0x117   :  { %v2312_v52 = vadd.f32 %v2017_v46, %v123_v51 }
 0x118   :  { %1906 = vmatmul.msk.f32.vlgmr.msra.gmra.mxu0 %vm67_vm0, %v2308_v50 }
 0x120   :  { %1907 = vmatmul.msk.f32.gmra.mxu0 %vm67_vm0, %v2312_v52 }
 0x195   :  { %v160_v54 = vpop.f32.mrf.mxu0 }
 0x196   :  { %v2322_v55 = vadd.f32 %v2319_v53, %v160_v54 }
 0x198   :  { %169 = vrot.lane.b32.xlu2 %v2322_v55, %s2159_s24  ;;  %v166_v56 = vmul.f32 0.35355338, %v2322_v55 }
 0x19a   :  { %234 = vrot.lane.b32.xlu0 %v166_v56, %s2821_s25 }
 0x19d   :  { %v163_v62 = vpop.f32.mrf.mxu0 }
 0x19e   :  { %v2358_v26 = vadd.f32 %v2319_v53, %v163_v62 }
 0x1a0   :  { %236 = vrot.lane.b32.xlu2 %v2322_v55, %s2829_s3  ;;  %v167_v37 = vmul.f32 0.35355338, %v2358_v26 }
 0x1a2   :  { %208 = vrot.lane.b32.xlu0 %v2322_v55, %s2162_s26 }
 0x1aa   :  { %301 = vrot.lane.b32.xlu0 %v2322_v55, %s2827_s27 }
 0x1b2   :  { %366 = vrot.lane.b32.xlu0 %v2322_v55, %s2825_s28 }
 0x1ba   :  { %364 = vrot.lane.b32.xlu0 %v166_v56, %s2819_s29 }
 0x1f2   :  { %v170_v57 = vpop.permute.xlu2 %169 }
 0x1f3   :  { %1908 = vmatpush.xpose.msk.msrb.mxu0 %vm171_vm8, %v170_v57 }
 0x1f6   :  { %1909 = vmatmul.msk.f32.vlgmr.msrb.gmra.mxu0 %vm171_vm8, %v166_v56 }
 0x1fa   :  { %v237_v58 = vpop.permute.xlu2 %236 }
 0x1fb   :  { %1911 = vmatpush.xpose.msk.msra.mxu3 %vm171_vm8, %v237_v58 }
 0x20c   :  { %v235_v59 = vpop.permute.xlu0 %234 }
 0x20d   :  { %1912 = vmatmul.msk.f32.vlgmr.msra.gmra.mxu3 %vm171_vm8, %v235_v59 }
 0x214   :  { %v209_v60 = vpop.permute.xlu0 %208 }
 0x215   :  { %229 = vmatpush.msra.mxu2 %v209_v60 }
 0x21c   :  { %v302_v61 = vpop.permute.xlu0 %301 }
 0x21d   :  { %1914 = vmatpush.xpose.msk.msra.mxu1 %vm171_vm8, %v302_v61 }
 0x224   :  { %v367_v22 = vpop.permute.xlu0 %366 }
 0x22c   :  { %v365_v25 = vpop.permute.xlu0 %364 }
 0x273   :  { %v194_v63 = vpop.f32.mrf.mxu0 }
 0x274   :  { %v197_v0 = vsel %vm171_vm8, %v194_v63, -inf }
 0x275   :  { %198 = vmax.xlane.f32.xlu1 %v197_v0 }
 0x290   :  { %v259_v1 = vpop.f32.mrf.mxu3 }
 0x291   :  { %v262_v2 = vsel %vm171_vm8, %v259_v1, -inf }
 0x292   :  { %263 = vmax.xlane.f32.xlu2 %v262_v2 }
 0x2aa   :  { %299 = vrot.lane.b32.xlu2 %v166_v56, %s2823_s0 }
 0x2e8   :  { %v199_v3 = vpop.xlane.xlu1 %198 }
 0x2e9   :  { %v200_v4 = vsub.f32 %v194_v63, %v199_v3 }
 0x2eb   :  { %v201_v5 = vmul.f32 1.442695, %v200_v4 }
 0x2ed   :  { %2042 = vpow2.f32 %v201_v5 }
 0x2f3   :  { %v2043_v6 = vpop.eup %2042 }
 0x2f4   :  { %v203_v7 = vsel %vm171_vm8, %v2043_v6, 0.0 }
 0x2f5   :  { %204 = vadd.xlane.f32.xlu1 %v203_v7 }
 0x305   :  { %v264_v8 = vpop.xlane.xlu2 %263 }
 0x306   :  { %v265_v9 = vsub.f32 %v259_v1, %v264_v8 }
 0x308   :  { %v266_v11 = vmul.f32 1.442695, %v265_v9  ;;  %v724_v9 = vld [vmem:[%s2802_s5 + $0x18] sm:$0xff] }
 0x30a   :  { %2044 = vpow2.f32 %v266_v11  ;;  %v723_v11 = vld [vmem:[%s2802_s5 + $0x10] sm:$0xff] }
 0x30d   :  { %v300_v12 = vpop.permute.xlu2 %299 }
 0x30e   :  { %1915 = vmatmul.msk.f32.vlgmr.msra.gmra.mxu1 %vm171_vm8, %v300_v12  ;;  %v722_v12 = vld [vmem:[%s2802_s5 + $0x8] sm:$0xff] }
 0x310   :  { %v2045_v13 = vpop.eup %2044 }
 0x311   :  { %v268_v14 = vsel %vm171_vm8, %v2045_v13, 0.0 }
 0x312   :  { %269 = vadd.xlane.f32.xlu1 %v268_v14 }
 0x32b   :  { %273 = vrot.lane.b32.xlu1 %v2322_v55, %s2167_s30 }
 0x368   :  { %v205_v15 = vpop.xlane.xlu1 %204 }
 0x369   :  { %2046 = vrcp.f32 %v205_v15 }
 0x36f   :  { %v2047_v16 = vpop.eup %2046 }
 0x370   :  { %v207_v17 = vmul.f32 %v2047_v16, %v2043_v6 }
 0x372   :  { %1910 = vmatmul.msk.f32.vlgmr.msra.gmra.mxu2 %vm171_vm8, %v207_v17 }
 0x385   :  { %v270_v20 = vpop.xlane.xlu1 %269 }
 0x386   :  { %2048 = vrcp.f32 %v270_v20 }
 0x38b   :  { %v324_v18 = vpop.f32.mrf.mxu1 }
 0x38c   :  { %v327_v19 = vsel %vm171_vm8, %v324_v18, -inf  ;;  %v2049_v21 = vpop.eup %2048 }
 0x38d   :  { %328 = vmax.xlane.f32.xlu1 %v327_v19  ;;  %v272_v24 = vmul.f32 %v2049_v21, %v2045_v13  ;;  %v721_v21 = vld [vmem:[%s2802_s5] sm:$0xff] }
 0x39d   :  { %v274_v23 = vpop.permute.xlu1 %273 }
 0x39e   :  { %294 = vmatpush.msrb.mxu2 %v274_v23 }
 0x39f   :  { %1913 = vmatmul.msk.f32.vlgmr.msrb.gmra.mxu2 %vm171_vm8, %v272_v24 }
 0x3a0   :  { %1917 = vmatpush.xpose.msk.msra.mxu2 %vm171_vm8, %v367_v22 }
 0x3a6   :  { %403 = vrot.lane.b32.xlu1 %v2322_v55, %s2168_s20 }
 0x3a7   :  { %1918 = vmatmul.msk.f32.vlgmr.msra.gmra.mxu2 %vm171_vm8, %v365_v25 }
 0x3ae   :  { %578 = vrot.lane.b32.xlu1 %v2358_v26, %s2827_s27 }
 0x3f5   :  { %v2363_v33 = vpop.f32.mrf.mxu2 }
 0x400   :  { %v329_v27 = vpop.xlane.xlu1 %328 }
 0x401   :  { %v330_v28 = vsub.f32 %v324_v18, %v329_v27 }
 0x403   :  { %v331_v29 = vmul.f32 1.442695, %v330_v28 }
 0x405   :  { %2050 = vpow2.f32 %v331_v29 }
 0x40b   :  { %v2051_v30 = vpop.eup %2050 }
 0x40c   :  { %v333_v31 = vsel %vm171_vm8, %v2051_v30, 0.0 }
 0x40d   :  { %334 = vadd.xlane.f32.xlu2 %v333_v31 }
 0x418   :  { %v404_v32 = vpop.permute.xlu1 %403 }
 0x419   :  { %424 = vmatpush.msrb.mxu1 %v404_v32 }
 0x420   :  { %v579_v48 = vpop.permute.xlu1 %578 }
 0x422   :  { %v296_v34 = vpop.f32.mrf.mxu2 }
 0x425   :  { %447 = vrot.lane.b32.xlu2 %v2358_v26, %s2159_s24 }
 0x42a   :  { %v389_v35 = vpop.f32.mrf.mxu2 }
 0x42b   :  { %v392_v36 = vsel %vm171_vm8, %v389_v35, -inf }
 0x42c   :  { %393 = vmax.xlane.f32.xlu0 %v392_v36 }
 0x42d   :  { %576 = vrot.lane.b32.xlu2 %v167_v37, %s2823_s0  ;;  %s2849_s0 = smov 72  }
 0x440   :  { %338 = vrot.lane.b32.xlu0 %v2322_v55, %s2833_s21 }
 0x448   :  { %513 = vrot.lane.b32.xlu0 %v2358_v26, %s2829_s3 }
 0x450   :  { %511 = vrot.lane.b32.xlu0 %v167_v37, %s2821_s25 }
 0x458   :  { %643 = vrot.lane.b32.xlu0 %v2358_v26, %s2825_s28  ;;  %s2847_s28 = smov 88  }
 0x460   :  { %430 = vrot.lane.b32.xlu0 %v296_v34, %s2831_s1 }
 0x480   :  { %v335_v41 = vpop.xlane.xlu2 %334 }
 0x488   :  { %v448_v47 = vpop.permute.xlu2 %447 }
 0x490   :  { %v577_v53 = vpop.permute.xlu2 %576 }
 0x49f   :  { %v394_v38 = vpop.xlane.xlu0 %393 }
 0x4a0   :  { %v395_v39 = vsub.f32 %v389_v35, %v394_v38 }
 0x4a2   :  { %v396_v40 = vmul.f32 1.442695, %v395_v39 }
 0x4a4   :  { %2052 = vpow2.f32 %v396_v40 }
 0x4a5   :  { %2054 = vrcp.f32 %v335_v41  ;;  %v2429_v41 = vld [vmem:[%s2803_s6] ss:$0 sm:$0xff] }
 0x4aa   :  { %v2053_v42 = vpop.eup %2052 }
 0x4ab   :  { %v398_v43 = vsel %vm171_vm8, %v2053_v42, 0.0  ;;  %v2055_v44 = vpop.eup %2054 }
 0x4ac   :  { %399 = vadd.xlane.f32.xlu1 %v398_v43  ;;  %v337_v46 = vmul.f32 %v2055_v44, %v2051_v30 }
 0x4b2   :  { %v339_v45 = vpop.permute.xlu0 %338 }
 0x4b3   :  { %359 = vmatpush.msrb.mxu3 %v339_v45 }
 0x4b4   :  { %1916 = vmatmul.msk.f32.vlgmr.msrb.gmra.mxu3 %vm171_vm8, %v337_v46 }
 0x4b5   :  { %1920 = vmatpush.xpose.msk.msra.mxu3 %vm171_vm8, %v448_v47 }
 0x4b9   :  { %1926 = vmatpush.xpose.msk.msrb.mxu3 %vm171_vm8, %v579_v48 }
 0x4ba   :  { %v514_v49 = vpop.permute.xlu0 %513 }
 0x4bb   :  { %1923 = vmatpush.xpose.msk.msrb.mxu2 %vm171_vm8, %v514_v49 }
 0x4bc   :  { %1921 = vmatmul.msk.f32.vlgmr.msra.gmra.mxu3 %vm171_vm8, %v167_v37 }
 0x4bd   :  { %747 = vmatpush.msra.mxu3 %v724_v9 }
 0x4bf   :  { %748 = vmatpush.msra.mxu3 %v723_v11 }
 0x4c1   :  { %749 = vmatpush.msra.mxu3 %v722_v12 }
 0x4c2   :  { %v512_v51 = vpop.permute.xlu0 %511 }
 0x4c3   :  { %1924 = vmatmul.msk.f32.vlgmr.msrb.gmra.mxu2 %vm171_vm8, %v512_v51  ;;  %750 = vmatpush.msra.mxu3 %v721_v21 }
 0x4c4   :  { %1927 = vmatmul.msk.f32.vlgmr.msrb.gmra.mxu3 %vm171_vm8, %v577_v53 }
 0x4c5   :  { %641 = vrot.lane.b32.xlu1 %v167_v37, %s2819_s29  ;;  %s2848_s29 = smov 80  }
 0x4ca   :  { %v644_v54 = vpop.permute.xlu0 %643 }
 0x4cb   :  { %1929 = vmatpush.xpose.msk.msra.mxu2 %vm171_vm8, %v644_v54 }
 0x4d2   :  { %v431_v1 = vpop.permute.xlu0 %430 }
 0x4d3   :  { %v441_v22 = vsel %vm171_vm8, %v2363_v33, %v431_v1 }
 0x51f   :  { %v400_v55 = vpop.xlane.xlu1 %399 }
 0x520   :  { %2056 = vrcp.f32 %v400_v55 }
 0x526   :  { %v2057_v56 = vpop.eup %2056 }
 0x527   :  { %v402_v57 = vmul.f32 %v2057_v56, %v2053_v42 }
 0x529   :  { %1919 = vmatmul.msk.f32.vlgmr.msrb.gmra.mxu1 %vm171_vm8, %v402_v57 }
 0x537   :  { %v361_v58 = vpop.f32.mrf.mxu3  ;;  %v642_v59 = vpop.permute.xlu1 %641 }
 0x538   :  { %434 = vrot.lane.b32.xlu2 %v361_v58, %s2835_s22  ;;  %1930 = vmatmul.msk.f32.vlgmr.msra.gmra.mxu2 %vm171_vm8, %v642_v59 }
 0x53f   :  { %v471_v60 = vpop.f32.mrf.mxu3 }
 0x540   :  { %v474_v61 = vsel %vm171_vm8, %v471_v60, -inf }
 0x541   :  { %475 = vmax.xlane.f32.xlu0 %v474_v61 }
 0x546   :  { %v536_v62 = vpop.f32.mrf.mxu2 }
 0x547   :  { %v539_v63 = vsel %vm171_vm8, %v536_v62, -inf  ;;  %v601_v14 = vpop.f32.mrf.mxu3 }
 0x548   :  { %v604_v15 = vsel %vm171_vm8, %v601_v14, -inf }
 0x561   :  { %540 = vmax.xlane.f32.xlu2 %v539_v63 }
 0x592   :  { %v435_v13 = vpop.permute.xlu2 %434 }
 0x593   :  { %v443_v23 = vsel %vm442_vm9, %v441_v22, %v435_v13 }
 0x5a6   :  { %v426_v0 = vpop.f32.mrf.mxu1 }
 0x5a7   :  { %438 = vrot.lane.b32.xlu1 %v426_v0, %s2837_s2 }
 0x5b4   :  { %v476_v2 = vpop.xlane.xlu0 %475 }
 0x5b5   :  { %v477_v3 = vsub.f32 %v471_v60, %v476_v2 }
 0x5b7   :  { %v478_v4 = vmul.f32 1.442695, %v477_v3  ;;  %v819_v3 = vld [vmem:[%s2806_s9 + $0x18] sm:$0xff] }
 0x5b9   :  { %2058 = vpow2.f32 %v478_v4  ;;  %v818_v4 = vld [vmem:[%s2806_s9 + $0x10] sm:$0xff] }
 0x5bb   :  { %v666_v5 = vpop.f32.mrf.mxu2 }
 0x5bc   :  { %v669_v6 = vsel %vm171_vm8, %v666_v5, -inf }
 0x5bd   :  { %670 = vmax.xlane.f32.xlu2 %v669_v6  ;;  %v816_v6 = vld [vmem:[%s2806_s9] sm:$0xff] }
 0x5bf   :  { %v2059_v7 = vpop.eup %2058 }
 0x5c0   :  { %v480_v8 = vsel %vm171_vm8, %v2059_v7, 0.0 }
 0x5c1   :  { %481 = vadd.xlane.f32.xlu0 %v480_v8 }
 0x5d1   :  { %605 = vmax.xlane.f32.xlu1 %v604_v15 }
 0x5d4   :  { %v541_v16 = vpop.xlane.xlu2 %540 }
 0x5d5   :  { %v542_v17 = vsub.f32 %v536_v62, %v541_v16  ;;  %485 = vrot.lane.b32.xlu0 %v2358_v26, %s2162_s26 }
 0x5d7   :  { %v543_v18 = vmul.f32 1.442695, %v542_v17  ;;  %v2458_v17 = vld [vmem:[%s2804_s7] ss:$0 sm:$0xff] }
 0x5d9   :  { %2060 = vpow2.f32 %v543_v18 }
 0x5dd   :  { %680 = vrot.lane.b32.xlu0 %v2358_v26, %s2168_s20 }
 0x5df   :  { %v2061_v19 = vpop.eup %2060 }
 0x5e0   :  { %v545_v20 = vsel %vm171_vm8, %v2061_v19, 0.0 }
 0x5e1   :  { %546 = vadd.xlane.f32.xlu1 %v545_v20  ;;  %v2463_v20 = vld [vmem:[%s2805_s8] ss:$0 sm:$0xff] }
 0x619   :  { %v439_v24 = vpop.permute.xlu1 %438 }
 0x61a   :  { %v445_v25 = vsel %vm444_vm10, %v443_v23, %v439_v24 }
 0x61b   :  { %1932 = vmatmul.msk.f32.vlgmr.msra.gmra.mxu3 %vm67_vm0, %v445_v25 }
 0x630   :  { %v671_v27 = vpop.xlane.xlu2 %670 }
 0x631   :  { %v672_v28 = vsub.f32 %v666_v5, %v671_v27  ;;  %v817_v5 = vld [vmem:[%s2806_s9 + $0x8] sm:$0xff] }
 0x633   :  { %v673_v29 = vmul.f32 1.442695, %v672_v28 }
 0x634   :  { %v482_v31 = vpop.xlane.xlu0 %481 }
 0x635   :  { %2062 = vpow2.f32 %v673_v29 }
 0x636   :  { %2064 = vrcp.f32 %v482_v31  ;;  %v877_v31 = vld [vmem:[%s2808_s11 + $0x30] sm:$0xff] }
 0x63b   :  { %v2063_v30 = vpop.eup %2062 }
 0x63c   :  { %v675_v32 = vsel %vm171_vm8, %v2063_v30, 0.0  ;;  %v2065_v34 = vpop.eup %2064 }
 0x63d   :  { %676 = vadd.xlane.f32.xlu1 %v675_v32  ;;  %v484_v36 = vmul.f32 %v2065_v34, %v2059_v7  ;;  %v876_v32 = vld [vmem:[%s2808_s11 + $0x28] sm:$0xff]  ;;  %v875_v34 = vld [vmem:[%s2808_s11 + $0x20] sm:$0xff] }
 0x644   :  { %v606_v35 = vpop.xlane.xlu1 %605 }
 0x645   :  { %v607_v33 = vsub.f32 %v601_v14, %v606_v35  ;;  %v874_v35 = vld [vmem:[%s2808_s11 + $0x18] sm:$0xff] }
 0x647   :  { %v608_v37 = vmul.f32 1.442695, %v607_v33  ;;  %v486_v38 = vpop.permute.xlu0 %485  ;;  %v873_v33 = vld [vmem:[%s2808_s11 + $0x10] sm:$0xff] }
 0x648   :  { %506 = vmatpush.msra.mxu0 %v486_v38  ;;  %v2499_v38 = vld [vmem:[%s2807_s10] ss:$0 sm:$0xff] }
 0x649   :  { %2066 = vpow2.f32 %v608_v37  ;;  %1922 = vmatmul.msk.f32.vlgmr.msra.gmra.mxu0 %vm171_vm8, %v484_v36  ;;  %v872_v36 = vld [vmem:[%s2808_s11 + $0x8] sm:$0xff]  ;;  %v871_v37 = vld [vmem:[%s2808_s11] sm:$0xff] }
 0x64f   :  { %v2067_v39 = vpop.eup %2066  ;;  %v681_v56 = vpop.permute.xlu0 %680 }
 0x650   :  { %v610_v40 = vsel %vm171_vm8, %v2067_v39, 0.0 }
 0x651   :  { %611 = vadd.xlane.f32.xlu2 %v610_v40 }
 0x654   :  { %v547_v46 = vpop.xlane.xlu1 %546 }
 0x655   :  { %2068 = vrcp.f32 %v547_v46 }
 0x656   :  { %615 = vrot.lane.b32.xlu1 %v2358_v26, %s2833_s21  ;;  %s2850_s21 = smov 112  }
 0x669   :  { %550 = vrot.lane.b32.xlu2 %v2358_v26, %s2167_s30  ;;  %v2069_v26 = vpop.eup %2068 }
 0x66a   :  { %v549_v53 = vmul.f32 %v2069_v26, %v2061_v19 }
 0x69e   :  { %v752_v42 = vpop.f32.mrf.mxu3 }
 0x69f   :  { %v753_v43 = vadd.f32 %v2429_v41, %v752_v42 }
 0x6a1   :  { %v758_v44 = vadd.f32 %v753_v43, %v2308_v50 }
 0x6a3   :  { %v762_v45 = vsel %vm67_vm0, %v758_v44, 0.0 }
 0x6a4   :  { %763 = vadd.xlane.f32.xlu0 %v762_v45 }
 0x6b0   :  { %v677_v47 = vpop.xlane.xlu1 %676 }
 0x6c4   :  { %v612_v48 = vpop.xlane.xlu2 %611 }
 0x6c5   :  { %2070 = vrcp.f32 %v612_v48 }
 0x6c6   :  { %2072 = vrcp.f32 %v677_v47  ;;  %v508_v63 = vpop.f32.mrf.mxu0 }
 0x6c8   :  { %v616_v49 = vpop.permute.xlu1 %615 }
 0x6c9   :  { %636 = vmatpush.msrb.mxu0 %v616_v49 }
 0x6cb   :  { %v2071_v51 = vpop.eup %2070  ;;  %842 = vmatpush.msra.mxu0 %v819_v3 }
 0x6cc   :  { %v614_v54 = vmul.f32 %v2071_v51, %v2067_v39  ;;  %v551_v55 = vpop.permute.xlu2 %550  ;;  %v2073_v50 = vpop.eup %2072 }
 0x6cd   :  { %571 = vmatpush.msra.mxu1 %v551_v55  ;;  %v679_v57 = vmul.f32 %v2073_v50, %v2063_v30  ;;  %843 = vmatpush.msra.mxu0 %v818_v4  ;;  %v878_v30 = vld [vmem:[%s2808_s11 + $0x38] sm:$0xff] }
 0x6ce   :  { %1925 = vmatmul.msk.f32.vlgmr.msra.gmra.mxu1 %vm171_vm8, %v549_v53  ;;  %1928 = vmatmul.msk.f32.vlgmr.msrb.gmra.mxu0 %vm171_vm8, %v614_v54 }
 0x6cf   :  { %701 = vmatpush.msrb.mxu1 %v681_v56  ;;  %844 = vmatpush.msra.mxu0 %v817_v5  ;;  %v2509_v56 = vld [vmem:[%s2809_s12] ss:$0 sm:$0xff] }
 0x6d0   :  { %898 = vmatpush.msrb.mxu2 %v878_v30 }
 0x6d1   :  { %845 = vmatpush.msra.mxu0 %v816_v6 }
 0x6d2   :  { %899 = vmatpush.msrb.mxu2 %v877_v31 }
 0x6d4   :  { %900 = vmatpush.msrb.mxu2 %v876_v32  ;;  %v2537_v32 = vld [vmem:[%s2810_s13] ss:$0 sm:$0xff] }
 0x6d6   :  { %1931 = vmatmul.msk.f32.vlgmr.msrb.gmra.mxu1 %vm171_vm8, %v679_v57  ;;  %901 = vmatpush.msrb.mxu2 %v875_v34 }
 0x6d8   :  { %902 = vmatpush.msrb.mxu2 %v874_v35 }
 0x6da   :  { %903 = vmatpush.msrb.mxu2 %v873_v33  ;;  %v2542_v33 = vld [vmem:[%s2811_s14] ss:$0 sm:$0xff] }
 0x6dc   :  { %904 = vmatpush.msrb.mxu2 %v872_v36 }
 0x6de   :  { %905 = vmatpush.msrb.mxu2 %v871_v37 }
 0x717   :  { %v764_v58 = vpop.xlane.xlu0 %763 }
 0x718   :  { %v768_v59 = vmul.f32 %v764_v58, %v2282_v10 }
 0x71a   :  { %v770_v60 = vsub.f32 %v758_v44, %v768_v59 }
 0x71c   :  { %v772_v61 = vmul.f32 %v770_v60, %v770_v60 }
 0x71e   :  { %v774_v62 = vsel %vm67_vm0, %v772_v61, 0.0 }
 0x71f   :  { %775 = vadd.xlane.f32.xlu2 %v774_v62 }
 0x74b   :  { %v573_v0 = vpop.f32.mrf.mxu1  ;;  %v638_v1 = vpop.f32.mrf.mxu0 }
 0x74c   :  { %707 = vrot.lane.b32.xlu1 %v573_v0, %s2831_s1  ;;  %s2852_s1 = smov 104  }
 0x753   :  { %v703_v2 = vpop.f32.mrf.mxu1 }
 0x754   :  { %711 = vrot.lane.b32.xlu1 %v638_v1, %s2835_s22 }
 0x75c   :  { %715 = vrot.lane.b32.xlu1 %v703_v2, %s2837_s2 }
 0x792   :  { %v776_v7 = vpop.xlane.xlu2 %775 }
 0x793   :  { %v780_v8 = vmul.f32 %v776_v7, %v2282_v10 }
 0x795   :  { %v782_v9 = vadd.f32 1e-05, %v780_v8 }
 0x797   :  { %2074 = vrsqrt.f32 %v782_v9  ;;  %vm790_vm12 = vweird.f32 %v782_v9 }
 0x79d   :  { %v2075_v11 = vpop.eup %2074 }
 0x79e   :  { %v785_v12 = vmul.f32 %v2075_v11, %v782_v9  ;;  %vm791_vm11 = vweird.f32 %v2075_v11 }
 0x79f   :  { %vm792_vm13 = vmor %vm790_vm12, %vm791_vm11 }
 0x7a0   :  { %v786_v13 = vmul.f32 %v2075_v11, %v785_v12 }
 0x7a2   :  { %v787_v14 = vmul.f32 0.5, %v786_v13 }
 0x7a4   :  { %v788_v15 = vsub.f32 1.5, %v787_v14 }
 0x7a6   :  { %v789_v16 = vmul.f32 %v2075_v11, %v788_v15 }
 0x7a8   :  { %v793_v18 = vsel %vm792_vm13, %v2075_v11, %v789_v16 }
 0x7a9   :  { %v804_v19 = vmul.f32 %v793_v18, %v770_v60 }
 0x7ab   :  { %v809_v21 = vmul.f32 %v2458_v17, %v804_v19  ;;  %v1941_v19 = vld [vmem:[%s2844_s23 + $0x38] sm:$0xff] }
 0x7ac   :  { %999 = vmatpush.msra.mxu1 %v1941_v19 }
 0x7ad   :  { %v814_v22 = vadd.f32 %v2463_v20, %v809_v21  ;;  %v1940_v21 = vld [vmem:[%s2844_s23 + $0x30] sm:$0xff] }
 0x7ae   :  { %1000 = vmatpush.msra.mxu1 %v1940_v21 }
 0x7af   :  { %1934 = vmatmul.msk.f32.vlgmr.msra.gmra.mxu0 %vm67_vm0, %v814_v22 }
 0x7be   :  { %v708_v23 = vpop.permute.xlu1 %707 }
 0x7bf   :  { %v718_v25 = vsel %vm171_vm8, %v508_v63, %v708_v23 }
 0x7c6   :  { %v712_v24 = vpop.permute.xlu1 %711 }
 0x7c7   :  { %v719_v27 = vsel %vm442_vm9, %v718_v25, %v712_v24 }
 0x7ce   :  { %v716_v28 = vpop.permute.xlu1 %715 }
 0x7cf   :  { %v720_v29 = vsel %vm444_vm10, %v719_v27, %v716_v28 }
 0x7d0   :  { %1933 = vmatmul.msk.f32.gmra.mxu3 %vm67_vm0, %v720_v29 }
 0x82c   :  { %v847_v39 = vpop.f32.mrf.mxu0 }
 0x82d   :  { %v848_v40 = vadd.f32 %v2499_v38, %v847_v39 }
 0x82f   :  { %v853_v42 = vmul.f32 %v848_v40, %v848_v40 }
 0x831   :  { %v855_v43 = vmul.f32 %v853_v42, %v848_v40 }
 0x833   :  { %v857_v44 = vmul.f32 0.044715, %v855_v43 }
 0x835   :  { %v859_v45 = vadd.f32 %v857_v44, %v848_v40 }
 0x837   :  { %v861_v46 = vmul.f32 0.7978846, %v859_v45 }
 0x839   :  { %2076 = vtanh.f32 %v861_v46 }
 0x83f   :  { %v2077_v47 = vpop.eup %2076 }
 0x840   :  { %v865_v48 = vadd.f32 1.0, %v2077_v47 }
 0x842   :  { %v867_v49 = vmul.f32 0.5, %v865_v48 }
 0x844   :  { %v869_v26 = vmul.f32 %v867_v49, %v848_v40 }
 0x846   :  { %1936 = vmatmul.msk.f32.vlgmr.msrb.gmra.mxu2 %vm883_vm14, %v869_v26 }
 0x853   :  { %v755_v51 = vpop.f32.mrf.mxu3 }
 0x854   :  { %v756_v53 = vadd.f32 %v2429_v41, %v755_v51  ;;  %v2026_v51 = vld [vmem:[%s2801_s4 + $0x1] ss:$0 sm:$0xff]  ;;  %s2851_s4 = smov 120  }
 0x856   :  { %v759_v54 = vadd.f32 %v756_v53, %v2312_v52 }
 0x858   :  { %v765_v55 = vsel %vm67_vm0, %v759_v54, 0.0 }
 0x859   :  { %766 = vadd.xlane.f32.xlu1 %v765_v55 }
 0x8c9   :  { %v907_v50 = vpop.f32.mrf.mxu2 }
 0x8ca   :  { %v908_v57 = vadd.f32 %v2509_v56, %v907_v50 }
 0x8cc   :  { %v767_v58 = vpop.xlane.xlu1 %766  ;;  %v913_v59 = vadd.f32 %v908_v57, %v814_v22  ;;  %v1939_v22 = vld [vmem:[%s2844_s23 + $0x28] sm:$0xff] }
 0x8cd   :  { %v769_v60 = vmul.f32 %v767_v58, %v2282_v10  ;;  %1001 = vmatpush.msra.mxu1 %v1939_v22 }
 0x8ce   :  { %v917_v61 = vsel %vm67_vm0, %v913_v59, 0.0 }
 0x8cf   :  { %v771_v41 = vsub.f32 %v759_v54, %v769_v60  ;;  %918 = vadd.xlane.f32.xlu2 %v917_v61 }
 0x8d1   :  { %v773_v52 = vmul.f32 %v771_v41, %v771_v41 }
 0x8d3   :  { %v777_v62 = vsel %vm67_vm0, %v773_v52, 0.0 }
 0x8d4   :  { %778 = vadd.xlane.f32.xlu0 %v777_v62 }
 0x942   :  { %v919_v63 = vpop.xlane.xlu2 %918 }
 0x943   :  { %v923_v0 = vmul.f32 %v919_v63, %v2282_v10 }
 0x945   :  { %v925_v1 = vsub.f32 %v913_v59, %v923_v0 }
 0x947   :  { %v779_v2 = vpop.xlane.xlu0 %778  ;;  %v927_v3 = vmul.f32 %v925_v1, %v925_v1 }
 0x948   :  { %v781_v4 = vmul.f32 %v779_v2, %v2282_v10 }
 0x949   :  { %v929_v5 = vsel %vm67_vm0, %v927_v3, 0.0 }
 0x94a   :  { %v783_v6 = vadd.f32 1e-05, %v781_v4  ;;  %930 = vadd.xlane.f32.xlu0 %v929_v5 }
 0x94c   :  { %2078 = vrsqrt.f32 %v783_v6  ;;  %vm800_vm1 = vweird.f32 %v783_v6 }
 0x952   :  { %v2079_v7 = vpop.eup %2078 }
 0x953   :  { %v795_v8 = vmul.f32 %v2079_v7, %v783_v6  ;;  %vm801_vm15 = vweird.f32 %v2079_v7 }
 0x954   :  { %vm802_vm2 = vmor %vm800_vm1, %vm801_vm15 }
 0x955   :  { %v796_v9 = vmul.f32 %v2079_v7, %v795_v8 }
 0x957   :  { %v797_v11 = vmul.f32 0.5, %v796_v9 }
 0x959   :  { %v798_v12 = vsub.f32 1.5, %v797_v11 }
 0x95b   :  { %v799_v13 = vmul.f32 %v2079_v7, %v798_v12 }
 0x95d   :  { %v803_v14 = vsel %vm802_vm2, %v2079_v7, %v799_v13 }
 0x95e   :  { %v805_v15 = vmul.f32 %v803_v14, %v771_v41 }
 0x960   :  { %v810_v16 = vmul.f32 %v2458_v17, %v805_v15  ;;  %v1938_v17 = vld [vmem:[%s2844_s23 + $0x20] sm:$0xff] }
 0x961   :  { %1002 = vmatpush.msra.mxu1 %v1938_v17 }
 0x962   :  { %v815_v18 = vadd.f32 %v2463_v20, %v810_v16 }
 0x964   :  { %1935 = vmatmul.msk.f32.gmra.mxu0 %vm67_vm0, %v815_v18 }
 0x9bd   :  { %v931_v20 = vpop.xlane.xlu0 %930 }
 0x9be   :  { %v935_v23 = vmul.f32 %v931_v20, %v2282_v10 }
 0x9c0   :  { %v937_v24 = vadd.f32 1e-05, %v935_v23 }
 0x9c2   :  { %2080 = vrsqrt.f32 %v937_v24  ;;  %vm945_vm4 = vweird.f32 %v937_v24 }
 0x9c8   :  { %v2081_v25 = vpop.eup %2080 }
 0x9c9   :  { %v940_v27 = vmul.f32 %v2081_v25, %v937_v24  ;;  %vm946_vm3 = vweird.f32 %v2081_v25 }
 0x9ca   :  { %vm947_vm5 = vmor %vm945_vm4, %vm946_vm3 }
 0x9cb   :  { %v941_v28 = vmul.f32 %v2081_v25, %v940_v27 }
 0x9cd   :  { %v942_v29 = vmul.f32 0.5, %v941_v28 }
 0x9cf   :  { %v943_v30 = vsub.f32 1.5, %v942_v29 }
 0x9d1   :  { %v944_v31 = vmul.f32 %v2081_v25, %v943_v30 }
 0x9d3   :  { %v948_v34 = vsel %vm947_vm5, %v2081_v25, %v944_v31 }
 0x9d4   :  { %v959_v35 = vmul.f32 %v948_v34, %v925_v1 }
 0x9d6   :  { %v964_v36 = vmul.f32 %v2537_v32, %v959_v35 }
 0x9d8   :  { %v2546_v37 = vadd.f32 %v2542_v33, %v964_v36 }
 0x9da   :  { %1943 = vmatmul.msk.f32.vlgmr.msra.gmra.mxu1 %vm67_vm0, %v2546_v37 }
 0x9e1   :  { %v850_v39 = vpop.f32.mrf.mxu0 }
 0x9e2   :  { %v851_v40 = vadd.f32 %v2499_v38, %v850_v39 }
 0x9e4   :  { %v854_v42 = vmul.f32 %v851_v40, %v851_v40 }
 0x9e6   :  { %v856_v43 = vmul.f32 %v854_v42, %v851_v40 }
 0x9e8   :  { %v858_v44 = vmul.f32 0.044715, %v856_v43 }
 0x9ea   :  { %v860_v45 = vadd.f32 %v858_v44, %v851_v40 }
 0x9ec   :  { %v862_v46 = vmul.f32 0.7978846, %v860_v45 }
 0x9ee   :  { %2082 = vtanh.f32 %v862_v46 }
 0x9f4   :  { %v2083_v47 = vpop.eup %2082 }
 0x9f5   :  { %v866_v48 = vadd.f32 1.0, %v2083_v47 }
 0x9f7   :  { %v868_v49 = vmul.f32 0.5, %v866_v48 }
 0x9f9   :  { %v870_v26 = vmul.f32 %v868_v49, %v851_v40 }
 0x9fb   :  { %1937 = vmatmul.msk.f32.gmra.mxu2 %vm883_vm14, %v870_v26 }
 0xa57   :  { %v1004_v53 = vpop.f32.mrf.mxu1 }
 0xa58   :  { %v2555_v54 = vadd.f32 %v2026_v51, %v1004_v53 }
 0xa5a   :  { %1013 = vrot.lane.b32.xlu2 %v2555_v54, %s2159_s24  ;;  %v1010_v38 = vmul.f32 0.35355338, %v2555_v54 }
 0xa62   :  { %1079 = vrot.lane.b32.xlu2 %v2555_v54, %s2847_s28 }
 0xa6a   :  { %1144 = vrot.lane.b32.xlu2 %v2555_v54, %s2848_s29 }
 0xa72   :  { %1209 = vrot.lane.b32.xlu2 %v2555_v54, %s2849_s0 }
 0xa7a   :  { %1142 = vrot.lane.b32.xlu2 %v1010_v38, %s2850_s21 }
 0xa7e   :  { %v910_v55 = vpop.f32.mrf.mxu2 }
 0xa7f   :  { %v911_v50 = vadd.f32 %v2509_v56, %v910_v55 }
 0xa81   :  { %v914_v57 = vadd.f32 %v911_v50, %v815_v18 }
 0xa83   :  { %v920_v58 = vsel %vm67_vm0, %v914_v57, 0.0 }
 0xa84   :  { %921 = vadd.xlane.f32.xlu0 %v920_v58 }
 0xab4   :  { %v1014_v59 = vpop.permute.xlu2 %1013 }
 0xab5   :  { %1945 = vmatpush.xpose.msk.msrb.mxu3 %vm171_vm8, %v1014_v59 }
 0xab8   :  { %1946 = vmatmul.msk.f32.vlgmr.msrb.gmra.mxu3 %vm171_vm8, %v1010_v38 }
 0xabc   :  { %v1080_v60 = vpop.permute.xlu2 %1079 }
 0xabd   :  { %1948 = vmatpush.xpose.msk.msrb.mxu1 %vm171_vm8, %v1080_v60 }
 0xac4   :  { %v1145_v61 = vpop.permute.xlu2 %1144 }
 0xacc   :  { %v1210_v41 = vpop.permute.xlu2 %1209 }
 0xacd   :  { %1954 = vmatpush.xpose.msk.msra.mxu1 %vm171_vm8, %v1210_v41 }
 0xad4   :  { %v1143_v34 = vpop.permute.xlu2 %1142 }
 0xaf7   :  { %v922_v52 = vpop.xlane.xlu0 %921 }
 0xaf8   :  { %v924_v62 = vmul.f32 %v922_v52, %v2282_v10 }
 0xafa   :  { %v926_v56 = vsub.f32 %v914_v57, %v924_v62 }
 0xafc   :  { %v928_v63 = vmul.f32 %v926_v56, %v926_v56 }
 0xafe   :  { %v932_v0 = vsel %vm67_vm0, %v928_v63, 0.0 }
 0xaff   :  { %933 = vadd.xlane.f32.xlu0 %v932_v0 }
 0xb13   :  { %1077 = vrot.lane.b32.xlu0 %v1010_v38, %s2851_s4 }
 0xb1b   :  { %1207 = vrot.lane.b32.xlu0 %v1010_v38, %s2852_s1 }
 0xb3b   :  { %v1037_v1 = vpop.f32.mrf.mxu3 }
 0xb3c   :  { %v1040_v2 = vsel %vm171_vm8, %v1037_v1, -inf }
 0xb3d   :  { %1041 = vmax.xlane.f32.xlu1 %v1040_v2 }
 0xb56   :  { %1051 = vrot.lane.b32.xlu1 %v2555_v54, %s2162_s26 }
 0xb72   :  { %v934_v3 = vpop.xlane.xlu0 %933 }
 0xb73   :  { %v936_v4 = vmul.f32 %v934_v3, %v2282_v10 }
 0xb75   :  { %v938_v5 = vadd.f32 1e-05, %v936_v4 }
 0xb77   :  { %2084 = vrsqrt.f32 %v938_v5  ;;  %vm955_vm7 = vweird.f32 %v938_v5 }
 0xb7d   :  { %v2085_v6 = vpop.eup %2084 }
 0xb7e   :  { %v950_v7 = vmul.f32 %v2085_v6, %v938_v5  ;;  %vm956_vm6 = vweird.f32 %v2085_v6 }
 0xb7f   :  { %vm957_vm11 = vmor %vm955_vm7, %vm956_vm6  ;;  %vm1824_vm6 = vcmask 1040384  }
 0xb80   :  { %v951_v8 = vmul.f32 %v2085_v6, %v950_v7 }
 0xb82   :  { %v952_v9 = vmul.f32 0.5, %v951_v8 }
 0xb84   :  { %v953_v11 = vsub.f32 1.5, %v952_v9 }
 0xb85   :  { %v1078_v18 = vpop.permute.xlu0 %1077 }
 0xb86   :  { %v954_v12 = vmul.f32 %v2085_v6, %v953_v11 }
 0xb88   :  { %v958_v13 = vsel %vm957_vm11, %v2085_v6, %v954_v12 }
 0xb89   :  { %v960_v14 = vmul.f32 %v958_v13, %v926_v56 }
 0xb8b   :  { %v965_v15 = vmul.f32 %v2537_v32, %v960_v14 }
 0xb8d   :  { %v2583_v16 = vadd.f32 %v2542_v33, %v965_v15  ;;  %v1208_v19 = vpop.permute.xlu0 %1207 }
 0xb8f   :  { %1944 = vmatmul.msk.f32.gmra.mxu1 %vm67_vm0, %v2583_v16 }
 0xb97   :  { %1949 = vmatmul.msk.f32.vlgmr.msrb.gmra.mxu1 %vm171_vm8, %v1078_v18 }
 0xb9f   :  { %1955 = vmatmul.msk.f32.vlgmr.msra.gmra.mxu1 %vm171_vm8, %v1208_v19 }
 0xbb0   :  { %v1042_v21 = vpop.xlane.xlu1 %1041 }
 0xbb1   :  { %v1043_v24 = vsub.f32 %v1037_v1, %v1042_v21 }
 0xbb3   :  { %v1044_v25 = vmul.f32 1.442695, %v1043_v24 }
 0xbb5   :  { %2086 = vpow2.f32 %v1044_v25 }
 0xbbb   :  { %v2087_v27 = vpop.eup %2086 }
 0xbbc   :  { %v1046_v28 = vsel %vm171_vm8, %v2087_v27, 0.0 }
 0xbc8   :  { %v1052_v22 = vpop.permute.xlu1 %1051 }
 0xbc9   :  { %1072 = vmatpush.msrb.mxu0 %v1052_v22 }
 0xbcb   :  { %1951 = vmatpush.xpose.msk.msra.mxu0 %vm171_vm8, %v1145_v61 }
 0xc0c   :  { %v1007_v17 = vpop.f32.mrf.mxu1 }
 0xc0d   :  { %v2590_v20 = vadd.f32 %v2026_v51, %v1007_v17 }
 0xc0f   :  { %1354 = vrot.lane.b32.xlu2 %v2590_v20, %s2847_s28  ;;  %1288 = vrot.lane.b32.xlu1 %v2590_v20, %s2159_s24  ;;  %v1011_v23 = vmul.f32 0.35355338, %v2590_v20  ;;  %s2853_s24 = smov 48  }
 0xc11   :  { %1352 = vrot.lane.b32.xlu0 %v1011_v23, %s2851_s4 }
 0xc14   :  { %v1102_v29 = vpop.f32.mrf.mxu1 }
 0xc15   :  { %v1105_v30 = vsel %vm171_vm8, %v1102_v29, -inf }
 0xc17   :  { %1484 = vrot.lane.b32.xlu2 %v2590_v20, %s2849_s0  ;;  %1419 = vrot.lane.b32.xlu1 %v2590_v20, %s2848_s29 }
 0xc1c   :  { %v1232_v31 = vpop.f32.mrf.mxu1 }
 0xc1d   :  { %v1235_v32 = vsel %vm171_vm8, %v1232_v31, -inf }
 0xc1f   :  { %1482 = vrot.lane.b32.xlu1 %v1011_v23, %s2852_s1 }
 0xc3b   :  { %1047 = vadd.xlane.f32.xlu0 %v1046_v28 }
 0xc40   :  { %1106 = vmax.xlane.f32.xlu2 %v1105_v30 }
 0xc49   :  { %1236 = vmax.xlane.f32.xlu1 %v1235_v32 }
 0xc4f   :  { %1417 = vrot.lane.b32.xlu0 %v1011_v23, %s2850_s21 }
 0xc69   :  { %v1355_v35 = vpop.permute.xlu2 %1354 }
 0xc6a   :  { %1960 = vmatpush.xpose.msk.msrb.mxu1 %vm171_vm8, %v1355_v35 }
 0xc71   :  { %v1485_v33 = vpop.permute.xlu2 %1484 }
 0xc72   :  { %1966 = vmatpush.xpose.msk.msra.mxu1 %vm171_vm8, %v1485_v33 }
 0xc81   :  { %v1289_v36 = vpop.permute.xlu1 %1288 }
 0xc83   :  { %v1353_v39 = vpop.permute.xlu0 %1352 }
 0xc84   :  { %1961 = vmatmul.msk.f32.vlgmr.msrb.gmra.mxu1 %vm171_vm8, %v1353_v39 }
 0xc89   :  { %v1420_v40 = vpop.permute.xlu1 %1419 }
 0xc91   :  { %v1483_v42 = vpop.permute.xlu1 %1482 }
 0xc92   :  { %1967 = vmatmul.msk.f32.vlgmr.msra.gmra.mxu1 %vm171_vm8, %v1483_v42 }
 0xcae   :  { %v1048_v43 = vpop.xlane.xlu0 %1047 }
 0xcaf   :  { %2088 = vrcp.f32 %v1048_v43 }
 0xcb3   :  { %v1107_v48 = vpop.xlane.xlu2 %1106 }
 0xcb4   :  { %v1108_v49 = vsub.f32 %v1102_v29, %v1107_v48 }
 0xcb5   :  { %v2089_v44 = vpop.eup %2088 }
 0xcb6   :  { %v1050_v45 = vmul.f32 %v2089_v44, %v2087_v27  ;;  %v1109_v53 = vmul.f32 1.442695, %v1108_v49 }
 0xcb8   :  { %1947 = vmatmul.msk.f32.vlgmr.msrb.gmra.mxu0 %vm171_vm8, %v1050_v45  ;;  %2090 = vpow2.f32 %v1109_v53 }
 0xcb9   :  { %1957 = vmatpush.xpose.msk.msrb.mxu0 %vm171_vm8, %v1289_v36 }
 0xcbc   :  { %v1237_v38 = vpop.xlane.xlu1 %1236 }
 0xcbd   :  { %v1238_v50 = vsub.f32 %v1232_v31, %v1237_v38 }
 0xcbe   :  { %v2091_v61 = vpop.eup %2090 }
 0xcbf   :  { %v1239_v60 = vmul.f32 1.442695, %v1238_v50  ;;  %v1111_v62 = vsel %vm171_vm8, %v2091_v61, 0.0 }
 0xcc0   :  { %1952 = vmatmul.msk.f32.vlgmr.msra.gmra.mxu0 %vm171_vm8, %v1143_v34 }
 0xcc1   :  { %1963 = vmatpush.xpose.msk.msra.mxu0 %vm171_vm8, %v1420_v40  ;;  %v1418_v46 = vpop.permute.xlu0 %1417  ;;  %2092 = vpow2.f32 %v1239_v60  ;;  %v1971_v60 = vld [vmem:[%s2802_s5 + $0x30] sm:$0xff] }
 0xcc7   :  { %v2093_v56 = vpop.eup %2092 }
 0xcc8   :  { %1958 = vmatmul.msk.f32.vlgmr.msrb.gmra.mxu0 %vm171_vm8, %v1011_v23  ;;  %v1241_v63 = vsel %vm171_vm8, %v2093_v56, 0.0 }
 0xcd0   :  { %1964 = vmatmul.msk.f32.vlgmr.msra.gmra.mxu0 %vm171_vm8, %v1418_v46 }
 0xd01   :  { %v1377_v55 = vpop.f32.mrf.mxu1 }
 0xd02   :  { %v1380_v59 = vsel %vm171_vm8, %v1377_v55, -inf }
 0xd0f   :  { %v1507_v41 = vpop.f32.mrf.mxu1 }
 0xd10   :  { %v1510_v52 = vsel %vm171_vm8, %v1507_v41, -inf }
 0xd35   :  { %v2617_v47 = vpop.f32.mrf.mxu0 }
 0xd3d   :  { %v1167_v26 = vpop.f32.mrf.mxu0 }
 0xd3e   :  { %v1170_v51 = vsel %vm171_vm8, %v1167_v26, -inf }
 0xd3f   :  { %1171 = vmax.xlane.f32.xlu0 %v1170_v51 }
 0xd45   :  { %v1312_v57 = vpop.f32.mrf.mxu0 }
 0xd46   :  { %v1315_v58 = vsel %vm171_vm8, %v1312_v57, -inf }
 0xd47   :  { %1316 = vmax.xlane.f32.xlu2 %v1315_v58  ;;  %1381 = vmax.xlane.f32.xlu0 %v1380_v59  ;;  %v1972_v59 = vld [vmem:[%s2802_s5 + $0x38] sm:$0xff] }
 0xd48   :  { %1590 = vmatpush.msrb.mxu0 %v1972_v59 }
 0xd4a   :  { %1591 = vmatpush.msrb.mxu0 %v1971_v60 }
 0xd4d   :  { %v1442_v21 = vpop.f32.mrf.mxu0 }
 0xd4e   :  { %v1445_v24 = vsel %vm171_vm8, %v1442_v21, -inf }
 0xd4f   :  { %1511 = vmax.xlane.f32.xlu2 %v1510_v52  ;;  %1112 = vadd.xlane.f32.xlu0 %v1111_v62 }
 0xd57   :  { %1242 = vadd.xlane.f32.xlu2 %v1241_v63 }
 0xd63   :  { %1116 = vrot.lane.b32.xlu0 %v2555_v54, %s2167_s30 }
 0xd6b   :  { %1246 = vrot.lane.b32.xlu0 %v2555_v54, %s2168_s20 }
 0xd6f   :  { %1181 = vrot.lane.b32.xlu2 %v2555_v54, %s2853_s24 }
 0xd73   :  { %1326 = vrot.lane.b32.xlu0 %v2590_v20, %s2162_s26  ;;  %s2854_s26 = smov 8  }
 0xd77   :  { %1391 = vrot.lane.b32.xlu2 %v2590_v20, %s2167_s30  ;;  %s2855_s30 = smov 24  }
 0xd7b   :  { %1456 = vrot.lane.b32.xlu0 %v2590_v20, %s2853_s24 }
 0xdb2   :  { %v1172_v0 = vpop.xlane.xlu0 %1171 }
 0xdb3   :  { %v1173_v13 = vsub.f32 %v1167_v26, %v1172_v0 }
 0xdb5   :  { %v1174_v18 = vmul.f32 1.442695, %v1173_v13 }
 0xdba   :  { %v1317_v1 = vpop.xlane.xlu2 %1316  ;;  %v1382_v2 = vpop.xlane.xlu0 %1381 }
 0xdbb   :  { %v1383_v3 = vsub.f32 %v1377_v55, %v1382_v2  ;;  %v1318_v23 = vsub.f32 %v1312_v57, %v1317_v1  ;;  %v1969_v2 = vld [vmem:[%s2802_s5 + $0x20] sm:$0xff] }
 0xdbd   :  { %v1384_v4 = vmul.f32 1.442695, %v1383_v3  ;;  %v1319_v27 = vmul.f32 1.442695, %v1318_v23 }
 0xdbf   :  { %2094 = vpow2.f32 %v1384_v4 }
 0xdc2   :  { %v1512_v5 = vpop.xlane.xlu2 %1511  ;;  %v1113_v9 = vpop.xlane.xlu0 %1112 }
 0xdc3   :  { %v1513_v6 = vsub.f32 %v1507_v41, %v1512_v5  ;;  %v1970_v41 = vld [vmem:[%s2802_s5 + $0x28] sm:$0xff] }
 0xdc4   :  { %1592 = vmatpush.msrb.mxu0 %v1970_v41 }
 0xdc5   :  { %v1514_v7 = vmul.f32 1.442695, %v1513_v6  ;;  %v2095_v8 = vpop.eup %2094 }
 0xdc6   :  { %v1386_v54 = vsel %vm171_vm8, %v2095_v8, 0.0  ;;  %1593 = vmatpush.msrb.mxu0 %v1969_v2  ;;  %v1988_v2 = vld [vmem:[%s2808_s11 + $0x58] sm:$0xff] }
 0xdc7   :  { %2096 = vpow2.f32 %v1514_v7  ;;  %1387 = vadd.xlane.f32.xlu1 %v1386_v54 }
 0xdc8   :  { %2098 = vrcp.f32 %v1113_v9 }
 0xdca   :  { %v1243_v11 = vpop.xlane.xlu2 %1242 }
 0xdcb   :  { %2100 = vrcp.f32 %v1243_v11 }
 0xdcc   :  { %2102 = vpow2.f32 %v1174_v18 }
 0xdcd   :  { %v2638_v12 = vpop.eup %2096  ;;  %2104 = vpow2.f32 %v1319_v27 }
 0xdce   :  { %v1516_v14 = vsel %vm171_vm8, %v2638_v12, 0.0  ;;  %v2099_v15 = vpop.eup %2098 }
 0xdcf   :  { %1517 = vadd.xlane.f32.xlu1 %v1516_v14  ;;  %v1115_v22 = vmul.f32 %v2099_v15, %v2091_v61 }
 0xdd1   :  { %v2101_v25 = vpop.eup %2100 }
 0xdd2   :  { %v1182_v19 = vpop.permute.xlu2 %1181  ;;  %v2103_v28 = vpop.eup %2102  ;;  %v1245_v29 = vmul.f32 %v2101_v25, %v2093_v56 }
 0xdd3   :  { %1202 = vmatpush.msra.mxu2 %v1182_v19  ;;  %v1176_v32 = vsel %vm171_vm8, %v2103_v28, 0.0  ;;  %v2105_v34 = vpop.eup %2104 }
 0xdd4   :  { %v1321_v33 = vsel %vm171_vm8, %v2105_v34, 0.0 }
 0xdd5   :  { %v1117_v17 = vpop.permute.xlu0 %1116 }
 0xdd6   :  { %1137 = vmatpush.msra.mxu3 %v1117_v17 }
 0xdd7   :  { %1950 = vmatmul.msk.f32.vlgmr.msra.gmra.mxu3 %vm171_vm8, %v1115_v22  ;;  %1446 = vmax.xlane.f32.xlu1 %v1445_v24 }
 0xdda   :  { %v1392_v31 = vpop.permute.xlu2 %1391 }
 0xddd   :  { %v1247_v30 = vpop.permute.xlu0 %1246 }
 0xdde   :  { %1267 = vmatpush.msrb.mxu3 %v1247_v30 }
 0xddf   :  { %1956 = vmatmul.msk.f32.vlgmr.msrb.gmra.mxu3 %vm171_vm8, %v1245_v29  ;;  %1177 = vadd.xlane.f32.xlu1 %v1176_v32 }
 0xde0   :  { %1412 = vmatpush.msra.mxu3 %v1392_v31 }
 0xde5   :  { %v1327_v35 = vpop.permute.xlu0 %1326 }
 0xde6   :  { %1347 = vmatpush.msrb.mxu2 %v1327_v35  ;;  %v1980_v35 = vld [vmem:[%s2806_s9 + $0x30] sm:$0xff] }
 0xde7   :  { %1322 = vadd.xlane.f32.xlu1 %v1321_v33  ;;  %v1979_v33 = vld [vmem:[%s2806_s9 + $0x28] sm:$0xff] }
 0xded   :  { %v1457_v55 = vpop.permute.xlu0 %1456 }
 0xe3a   :  { %v1388_v36 = vpop.xlane.xlu1 %1387 }
 0xe3b   :  { %2106 = vrcp.f32 %v1388_v36 }
 0xe41   :  { %v2107_v39 = vpop.eup %2106 }
 0xe42   :  { %v1390_v40 = vmul.f32 %v2107_v39, %v2095_v8  ;;  %v1518_v42 = vpop.xlane.xlu1 %1517 }
 0xe44   :  { %1962 = vmatmul.msk.f32.vlgmr.msra.gmra.mxu3 %vm171_vm8, %v1390_v40 }
 0xe4a   :  { %v1447_v43 = vpop.xlane.xlu1 %1446 }
 0xe4b   :  { %v1448_v44 = vsub.f32 %v1442_v21, %v1447_v43 }
 0xe4d   :  { %v1449_v45 = vmul.f32 1.442695, %v1448_v44 }
 0xe4f   :  { %2108 = vpow2.f32 %v1449_v45 }
 0xe52   :  { %v1178_v46 = vpop.xlane.xlu1 %1177 }
 0xe53   :  { %2110 = vrcp.f32 %v1178_v46 }
 0xe55   :  { %v2109_v48 = vpop.eup %2108 }
 0xe56   :  { %v1451_v49 = vsel %vm171_vm8, %v2109_v48, 0.0 }
 0xe57   :  { %1452 = vadd.xlane.f32.xlu1 %v1451_v49 }
 0xe59   :  { %v2111_v26 = vpop.eup %2110 }
 0xe5a   :  { %v1139_v51 = vpop.f32.mrf.mxu3  ;;  %v1180_v53 = vmul.f32 %v2111_v26, %v2103_v28  ;;  %v1323_v38 = vpop.xlane.xlu1 %1322 }
 0xe5b   :  { %1273 = vrot.lane.b32.xlu2 %v1139_v51, %s2854_s26  ;;  %2112 = vrcp.f32 %v1323_v38 }
 0xe5c   :  { %1953 = vmatmul.msk.f32.vlgmr.msra.gmra.mxu2 %vm171_vm8, %v1180_v53 }
 0xe5d   :  { %1477 = vmatpush.msra.mxu2 %v1457_v55  ;;  %v2028_v55 = vld [vmem:[%s2804_s7 + $0x1] ss:$0 sm:$0xff] }
 0xe61   :  { %v2113_v50 = vpop.eup %2112 }
 0xe62   :  { %v1269_v57 = vpop.f32.mrf.mxu3  ;;  %v1325_v58 = vmul.f32 %v2113_v50, %v2105_v34  ;;  %v1981_v34 = vld [vmem:[%s2806_s9 + $0x38] sm:$0xff] }
 0xe63   :  { %1281 = vrot.lane.b32.xlu2 %v1269_v57, %s2855_s30 }
 0xe64   :  { %1959 = vmatmul.msk.f32.vlgmr.msrb.gmra.mxu2 %vm171_vm8, %v1325_v58  ;;  %v2029_v58 = vld [vmem:[%s2805_s8 + $0x1] ss:$0 sm:$0xff] }
 0xe65   :  { %1689 = vmatpush.msrb.mxu2 %v1981_v34 }
 0xe67   :  { %1690 = vmatpush.msrb.mxu2 %v1980_v35  ;;  %v2031_v35 = vld [vmem:[%s2809_s12 + $0x1] ss:$0 sm:$0xff]  ;;  %s1897_s12 = sshll.u32 %s2816_s19, 4  ;;  %s1898_s12 = int_to_ptr.hbm [resolvable:$true] %s1897_s12 }
 0xe69   :  { %1691 = vmatpush.msrb.mxu2 %v1979_v33 }
 0xe70   :  { %1521 = vrot.lane.b32.xlu1 %v2590_v20, %s2168_s20  ;;  %s2856_s20 = smov 16  }
 0xeb5   :  { %v1274_v3 = vpop.permute.xlu2 %1273 }
 0xeb6   :  { %v1284_v5 = vsel %vm171_vm8, %v2617_v47, %v1274_v3 }
 0xebd   :  { %v1282_v7 = vpop.permute.xlu2 %1281 }
 0xec7   :  { %v1414_v1 = vpop.f32.mrf.mxu3 }
 0xeca   :  { %v1453_v61 = vpop.xlane.xlu1 %1452 }
 0xecb   :  { %2114 = vrcp.f32 %v1453_v61 }
 0xecc   :  { %2116 = vrcp.f32 %v1518_v42 }
 0xed1   :  { %v2115_v52 = vpop.eup %2114 }
 0xed2   :  { %v1455_v62 = vmul.f32 %v2115_v52, %v2109_v48  ;;  %v2117_v20 = vpop.eup %2116 }
 0xed3   :  { %v1520_v63 = vmul.f32 %v2117_v20, %v2638_v12  ;;  %v2027_v12 = vld [vmem:[%s2803_s6 + $0x1] ss:$0 sm:$0xff]  ;;  %v1991_v20 = vld [vmem:[%s2808_s11 + $0x70] sm:$0xff] }
 0xed4   :  { %1965 = vmatmul.msk.f32.vlgmr.msra.gmra.mxu2 %vm171_vm8, %v1455_v62  ;;  %v1992_v62 = vld [vmem:[%s2808_s11 + $0x78] sm:$0xff] }
 0xed5   :  { %1746 = vmatpush.msrb.mxu1 %v1992_v62  ;;  %v1829_v62 = vld [vmem:[%s2812_s15 + $0x18] sm:$0xff] }
 0xed7   :  { %1747 = vmatpush.msrb.mxu1 %v1991_v20  ;;  %v1828_v20 = vld [vmem:[%s2812_s15 + $0x10] sm:$0xff] }
 0xedf   :  { %v1204_v56 = vpop.f32.mrf.mxu2 }
 0xee0   :  { %1277 = vrot.lane.b32.xlu0 %v1204_v56, %s2856_s20  ;;  %v1990_v56 = vld [vmem:[%s2808_s11 + $0x68] sm:$0xff] }
 0xee1   :  { %1748 = vmatpush.msrb.mxu1 %v1990_v56 }
 0xee2   :  { %v1522_v0 = vpop.permute.xlu1 %1521 }
 0xee3   :  { %1542 = vmatpush.msrb.mxu3 %v1522_v0 }
 0xee4   :  { %1968 = vmatmul.msk.f32.vlgmr.msrb.gmra.mxu3 %vm171_vm8, %v1520_v63  ;;  %v1989_v63 = vld [vmem:[%s2808_s11 + $0x60] sm:$0xff] }
 0xee5   :  { %1749 = vmatpush.msrb.mxu1 %v1989_v63  ;;  %1849 = vmatpush.msra.mxu3 %v1829_v62  ;;  %v1827_v63 = vld [vmem:[%s2812_s15 + $0x8] sm:$0xff] }
 0xee7   :  { %v1349_v4 = vpop.f32.mrf.mxu2  ;;  %1750 = vmatpush.msrb.mxu1 %v1988_v2  ;;  %1850 = vmatpush.msra.mxu3 %v1828_v20 }
 0xee8   :  { %1548 = vrot.lane.b32.xlu0 %v1414_v1, %s2854_s26 }
 0xee9   :  { %1851 = vmatpush.msra.mxu3 %v1827_v63 }
 0xf52   :  { %v1278_v6 = vpop.permute.xlu0 %1277 }
 0xf53   :  { %v1285_v8 = vsel %vm442_vm9, %v1284_v5, %v1278_v6  ;;  %v1986_v6 = vld [vmem:[%s2808_s11 + $0x48] sm:$0xff] }
 0xf54   :  { %v1286_v54 = vsel %vm444_vm10, %v1285_v8, %v1282_v7  ;;  %v1985_v7 = vld [vmem:[%s2808_s11 + $0x40] sm:$0xff] }
 0xf55   :  { %1974 = vmatmul.msk.f32.vlgmr.msrb.gmra.mxu0 %vm67_vm0, %v1286_v54 }
 0xf57   :  { %v1479_v9 = vpop.f32.mrf.mxu2 }
 0xf58   :  { %1552 = vrot.lane.b32.xlu2 %v1479_v9, %s2856_s20 }
 0xf5a   :  { %v1549_v13 = vpop.permute.xlu0 %1548 }
 0xf5b   :  { %v1559_v21 = vsel %vm171_vm8, %v1349_v4, %v1549_v13  ;;  %v1987_v4 = vld [vmem:[%s2808_s11 + $0x50] sm:$0xff] }
 0xf5c   :  { %1751 = vmatpush.msrb.mxu1 %v1987_v4 }
 0xf5e   :  { %1752 = vmatpush.msrb.mxu1 %v1986_v6 }
 0xf60   :  { %1753 = vmatpush.msrb.mxu1 %v1985_v7 }
 0xf67   :  { %v1544_v11 = vpop.f32.mrf.mxu3 }
 0xf68   :  { %1556 = vrot.lane.b32.xlu0 %v1544_v11, %s2855_s30  ;;  %v2030_v11 = vld [vmem:[%s2807_s10 + $0x1] ss:$0 sm:$0xff] }
 0xfb2   :  { %v1553_v18 = vpop.permute.xlu2 %1552 }
 0xfb3   :  { %v1560_v22 = vsel %vm442_vm9, %v1559_v21, %v1553_v18 }
 0xfd2   :  { %v1595_v47 = vpop.f32.mrf.mxu0 }
 0xfd3   :  { %v1596_v14 = vadd.f32 %v2027_v12, %v1595_v47 }
 0xfd5   :  { %v1601_v15 = vadd.f32 %v1596_v14, %v2546_v37 }
 0xfd7   :  { %v1607_v19 = vsel %vm67_vm0, %v1601_v15, 0.0 }
 0xfd8   :  { %1608 = vadd.xlane.f32.xlu1 %v1607_v19 }
 0xfda   :  { %v1557_v17 = vpop.permute.xlu0 %1556 }
 0xfdb   :  { %v1561_v23 = vsel %vm444_vm10, %v1560_v22, %v1557_v17 }
 0xfdc   :  { %1975 = vmatmul.msk.f32.gmra.mxu0 %vm67_vm0, %v1561_v23 }
0x104b   :  { %v1609_v24 = vpop.xlane.xlu1 %1608 }
0x104c   :  { %v1613_v25 = vmul.f32 %v1609_v24, %v2282_v10 }
0x104e   :  { %v1615_v27 = vsub.f32 %v1601_v15, %v1613_v25 }
0x1050   :  { %v1617_v28 = vmul.f32 %v1615_v27, %v1615_v27 }
0x1052   :  { %v1619_v37 = vsel %vm67_vm0, %v1617_v28, 0.0 }
0x1053   :  { %1620 = vadd.xlane.f32.xlu0 %v1619_v37 }
0x1059   :  { %v1598_v29 = vpop.f32.mrf.mxu0 }
0x105a   :  { %v1599_v30 = vadd.f32 %v2027_v12, %v1598_v29 }
0x105c   :  { %v1602_v31 = vadd.f32 %v1599_v30, %v2583_v16  ;;  %v1978_v16 = vld [vmem:[%s2806_s9 + $0x20] sm:$0xff]  ;;  %s2173_s9 = smov [#allocation2]  }
0x105d   :  { %1692 = vmatpush.msrb.mxu2 %v1978_v16  ;;  %s1895_s10 = sshll.u32 %s2173_s9, 4  ;;  %s1896_s10 = int_to_ptr.vmem [resolvable:$true] %s1895_s10 }
0x105e   :  { %v1610_v32 = vsel %vm67_vm0, %v1602_v31, 0.0 }
0x105f   :  { %1611 = vadd.xlane.f32.xlu2 %v1610_v32 }
0x10c6   :  { %v1621_v36 = vpop.xlane.xlu0 %1620 }
0x10c7   :  { %v1625_v39 = vmul.f32 %v1621_v36, %v2282_v10 }
0x10c9   :  { %v1627_v40 = vadd.f32 1e-05, %v1625_v39 }
0x10cb   :  { %2118 = vrsqrt.f32 %v1627_v40  ;;  %vm1635_vm9 = vweird.f32 %v1627_v40 }
0x10d1   :  { %v2119_v42 = vpop.eup %2118 }
0x10d2   :  { %v1630_v43 = vmul.f32 %v2119_v42, %v1627_v40  ;;  %v1612_v44 = vpop.xlane.xlu2 %1611  ;;  %vm1636_vm8 = vweird.f32 %v2119_v42 }
0x10d3   :  { %v1614_v45 = vmul.f32 %v1612_v44, %v2282_v10  ;;  %vm1637_vm10 = vmor %vm1635_vm9, %vm1636_vm8 }
0x10d4   :  { %v1631_v46 = vmul.f32 %v2119_v42, %v1630_v43 }
0x10d5   :  { %v1616_v48 = vsub.f32 %v1602_v31, %v1614_v45 }
0x10d6   :  { %v1632_v49 = vmul.f32 0.5, %v1631_v46 }
0x10d7   :  { %v1618_v26 = vmul.f32 %v1616_v48, %v1616_v48 }
0x10d8   :  { %v1633_v51 = vsub.f32 1.5, %v1632_v49 }
0x10d9   :  { %v1622_v53 = vsel %vm67_vm0, %v1618_v26, 0.0 }
0x10da   :  { %v1634_v38 = vmul.f32 %v2119_v42, %v1633_v51  ;;  %1623 = vadd.xlane.f32.xlu2 %v1622_v53 }
0x10dc   :  { %v1638_v50 = vsel %vm1637_vm10, %v2119_v42, %v1634_v38 }
0x10dd   :  { %v1649_v57 = vmul.f32 %v1638_v50, %v1615_v27 }
0x10df   :  { %v1654_v59 = vmul.f32 %v2028_v55, %v1649_v57 }
0x10e1   :  { %v1659_v60 = vadd.f32 %v2029_v58, %v1654_v59 }
0x10e3   :  { %1983 = vmatmul.msk.f32.vlgmr.msrb.gmra.mxu2 %vm67_vm0, %v1659_v60 }
0x114d   :  { %v1624_v61 = vpop.xlane.xlu2 %1623 }
0x114e   :  { %v1626_v41 = vmul.f32 %v1624_v61, %v2282_v10 }
0x1150   :  { %v1628_v52 = vadd.f32 1e-05, %v1626_v41 }
0x1152   :  { %2120 = vrsqrt.f32 %v1628_v52  ;;  %vm1645_vm13 = vweird.f32 %v1628_v52 }
0x1158   :  { %v2121_v0 = vpop.eup %2120 }
0x1159   :  { %v1640_v1 = vmul.f32 %v2121_v0, %v1628_v52  ;;  %vm1646_vm12 = vweird.f32 %v2121_v0 }
0x115a   :  { %vm1647_vm15 = vmor %vm1645_vm13, %vm1646_vm12 }
0x115b   :  { %v1641_v3 = vmul.f32 %v2121_v0, %v1640_v1 }
0x115d   :  { %v1642_v5 = vmul.f32 0.5, %v1641_v3 }
0x115f   :  { %v1643_v8 = vsub.f32 1.5, %v1642_v5 }
0x1161   :  { %v1644_v54 = vmul.f32 %v2121_v0, %v1643_v8 }
0x1163   :  { %v1648_v9 = vsel %vm1647_vm15, %v2121_v0, %v1644_v54  ;;  %v1826_v0 = vld [vmem:[%s2812_s15] sm:$0xff] }
0x1164   :  { %v1650_v12 = vmul.f32 %v1648_v9, %v1616_v48  ;;  %1852 = vmatpush.msra.mxu3 %v1826_v0 }
0x1166   :  { %v1694_v13 = vpop.f32.mrf.mxu2  ;;  %v1655_v47 = vmul.f32 %v2028_v55, %v1650_v12 }
0x1167   :  { %v1695_v14 = vadd.f32 %v2030_v11, %v1694_v13 }
0x1168   :  { %v1660_v15 = vadd.f32 %v2029_v58, %v1655_v47 }
0x1169   :  { %v1700_v18 = vmul.f32 %v1695_v14, %v1695_v14 }
0x116a   :  { %1984 = vmatmul.msk.f32.gmra.mxu2 %vm67_vm0, %v1660_v15 }
0x116b   :  { %v1702_v19 = vmul.f32 %v1700_v18, %v1695_v14 }
0x116d   :  { %v1704_v21 = vmul.f32 0.044715, %v1702_v19 }
0x116f   :  { %v1706_v22 = vadd.f32 %v1704_v21, %v1695_v14 }
0x1171   :  { %v1708_v17 = vmul.f32 0.7978846, %v1706_v22 }
0x1173   :  { %2122 = vtanh.f32 %v1708_v17  ;;  %v2033_v17 = vld [vmem:[%s2811_s14 + $0x1] ss:$0 sm:$0xff] }
0x1179   :  { %v2123_v23 = vpop.eup %2122 }
0x117a   :  { %v1712_v24 = vadd.f32 1.0, %v2123_v23 }
0x117c   :  { %v1714_v25 = vmul.f32 0.5, %v1712_v24 }
0x117e   :  { %v1716_v27 = vmul.f32 %v1714_v25, %v1695_v14 }
0x1180   :  { %1994 = vmatmul.msk.f32.vlgmr.msrb.gmra.mxu1 %vm883_vm14, %v1716_v27 }
0x11ed   :  { %v1697_v28 = vpop.f32.mrf.mxu2 }
0x11ee   :  { %v1698_v37 = vadd.f32 %v2030_v11, %v1697_v28  ;;  %v1861_v28 = vld [vmem:[%s2814_s17 + $0x18] sm:$0xff] }
0x11ef   :  { %1881 = vmatpush.msrb.mxu3 %v1861_v28 }
0x11f0   :  { %v1701_v29 = vmul.f32 %v1698_v37, %v1698_v37 }
0x11f2   :  { %v1703_v30 = vmul.f32 %v1701_v29, %v1698_v37  ;;  %v1859_v29 = vld [vmem:[%s2814_s17 + $0x8] sm:$0xff] }
0x11f4   :  { %v1705_v31 = vmul.f32 0.044715, %v1703_v30  ;;  %v1858_v30 = vld [vmem:[%s2814_s17] sm:$0xff] }
0x11f6   :  { %v1707_v32 = vadd.f32 %v1705_v31, %v1698_v37  ;;  %v2034_v31 = vld [vmem:[%s2813_s16] ss:$0 sm:$0xff] }
0x11f8   :  { %v1709_v34 = vmul.f32 0.7978846, %v1707_v32 }
0x11fa   :  { %2124 = vtanh.f32 %v1709_v34 }
0x11fd   :  { %v1755_v33 = vpop.f32.mrf.mxu1 }
0x11fe   :  { %v1756_v16 = vadd.f32 %v2031_v35, %v1755_v33  ;;  %v2035_v33 = vld [vmem:[%s2815_s18] ss:$0 sm:$0xff] }
0x1200   :  { %v2125_v36 = vpop.eup %2124  ;;  %v1761_v39 = vadd.f32 %v1756_v16, %v1659_v60 }
0x1201   :  { %v1713_v40 = vadd.f32 1.0, %v2125_v36 }
0x1202   :  { %v1767_v42 = vsel %vm67_vm0, %v1761_v39, 0.0 }
0x1203   :  { %1768 = vadd.xlane.f32.xlu0 %v1767_v42  ;;  %v1715_v43 = vmul.f32 0.5, %v1713_v40 }
0x1205   :  { %v1717_v44 = vmul.f32 %v1715_v43, %v1698_v37  ;;  %v1860_v37 = vld [vmem:[%s2814_s17 + $0x10] sm:$0xff] }
0x1206   :  { %1882 = vmatpush.msrb.mxu3 %v1860_v37 }
0x1207   :  { %1995 = vmatmul.msk.f32.gmra.mxu1 %vm883_vm14, %v1717_v44 }
0x1208   :  { %1883 = vmatpush.msrb.mxu3 %v1859_v29 }
0x120a   :  { %1884 = vmatpush.msrb.mxu3 %v1858_v30 }
0x1276   :  { %v1769_v45 = vpop.xlane.xlu0 %1768 }
0x1277   :  { %v1773_v48 = vmul.f32 %v1769_v45, %v2282_v10 }
0x1279   :  { %v1775_v51 = vsub.f32 %v1761_v39, %v1773_v48 }
0x127b   :  { %v1777_v38 = vmul.f32 %v1775_v51, %v1775_v51 }
0x127d   :  { %v1779_v55 = vsel %vm67_vm0, %v1777_v38, 0.0 }
0x1284   :  { %v1758_v46 = vpop.f32.mrf.mxu1 }
0x1285   :  { %v1759_v49 = vadd.f32 %v2031_v35, %v1758_v46 }
0x1287   :  { %v1762_v26 = vadd.f32 %v1759_v49, %v1660_v15 }
0x1289   :  { %v1770_v53 = vsel %vm67_vm0, %v1762_v26, 0.0 }
0x128a   :  { %1771 = vadd.xlane.f32.xlu1 %v1770_v53 }
0x1292   :  { %1780 = vadd.xlane.f32.xlu1 %v1779_v55 }
0x12fd   :  { %v1772_v50 = vpop.xlane.xlu1 %1771 }
0x12fe   :  { %v1774_v57 = vmul.f32 %v1772_v50, %v2282_v10 }
0x1300   :  { %v1776_v58 = vsub.f32 %v1762_v26, %v1774_v57 }
0x1302   :  { %v1778_v59 = vmul.f32 %v1776_v58, %v1776_v58 }
0x1304   :  { %v1782_v60 = vsel %vm67_vm0, %v1778_v59, 0.0 }
0x1305   :  { %1783 = vadd.xlane.f32.xlu2 %v1782_v60  ;;  %v1781_v61 = vpop.xlane.xlu1 %1780 }
0x1306   :  { %v1785_v41 = vmul.f32 %v1781_v61, %v2282_v10 }
0x1308   :  { %v1787_v52 = vadd.f32 1e-05, %v1785_v41 }
0x130a   :  { %2126 = vrsqrt.f32 %v1787_v52  ;;  %vm1795_vm1 = vweird.f32 %v1787_v52 }
0x1310   :  { %v2127_v56 = vpop.eup %2126 }
0x1311   :  { %v1790_v1 = vmul.f32 %v2127_v56, %v1787_v52  ;;  %vm1796_vm14 = vweird.f32 %v2127_v56 }
0x1312   :  { %vm1797_vm2 = vmor %vm1795_vm1, %vm1796_vm14 }
0x1313   :  { %v1791_v4 = vmul.f32 %v2127_v56, %v1790_v1 }
0x1315   :  { %v1792_v6 = vmul.f32 0.5, %v1791_v4 }
0x1317   :  { %v1793_v7 = vsub.f32 1.5, %v1792_v6 }
0x1319   :  { %v1794_v9 = vmul.f32 %v2127_v56, %v1793_v7 }
0x131b   :  { %v1798_v13 = vsel %vm1797_vm2, %v2127_v56, %v1794_v9 }
0x131c   :  { %v1809_v15 = vmul.f32 %v1798_v13, %v1775_v51 }
0x1378   :  { %v1784_v2 = vpop.xlane.xlu2 %1783 }
0x1379   :  { %v1786_v3 = vmul.f32 %v1784_v2, %v2282_v10  ;;  %v2032_v10 = vld [vmem:[%s2810_s13 + $0x1] ss:$0 sm:$0xff] }
0x137a   :  { %v1814_v21 = vmul.f32 %v2032_v10, %v1809_v15 }
0x137b   :  { %v1788_v5 = vadd.f32 1e-05, %v1786_v3 }
0x137c   :  { %v1819_v24 = vadd.f32 %v2033_v17, %v1814_v21 }
0x137d   :  { %2128 = vrsqrt.f32 %v1788_v5  ;;  %vm1805_vm4 = vweird.f32 %v1788_v5 }
0x1383   :  { %v2129_v8 = vpop.eup %2128 }
0x1384   :  { %v1800_v54 = vmul.f32 %v2129_v8, %v1788_v5  ;;  %vm1806_vm3 = vweird.f32 %v2129_v8 }
0x1385   :  { %vm1807_vm5 = vmor %vm1805_vm4, %vm1806_vm3 }
0x1386   :  { %v1801_v11 = vmul.f32 %v2129_v8, %v1800_v54 }
0x1388   :  { %v1802_v12 = vmul.f32 0.5, %v1801_v11 }
0x138a   :  { %v1803_v47 = vsub.f32 1.5, %v1802_v12 }
0x138c   :  { %v1804_v14 = vmul.f32 %v2129_v8, %v1803_v47 }
0x138e   :  { %v1808_v18 = vsel %vm1807_vm5, %v2129_v8, %v1804_v14 }
0x138f   :  { %v1810_v19 = vmul.f32 %v1808_v18, %v1776_v58 }
0x1391   :  { %v1815_v22 = vmul.f32 %v2032_v10, %v1810_v19 }
0x1393   :  { %v1820_v23 = vadd.f32 %v2033_v17, %v1815_v22 }
0x1395   :  { %v1822_v25 = vrot.slane %v1820_v23, 7 }
0x1397   :  { %v1825_v27 = vsel %vm1824_vm6, %v1819_v24, %v1822_v25 }
0x1398   :  { %1998 = vmatmul.msk.f32.vlgmr.msra.gmra.mxu3 %vm67_vm0, %v1825_v27 }
0x141b   :  { %v1854_v32 = vpop.f32.mrf.mxu3 }
0x141c   :  { %v1855_v34 = vadd.f32 %v2034_v31, %v1854_v32 }
0x141e   :  { %2130 = vtanh.f32 %v1855_v34 }
0x1424   :  { %v2131_v35 = vpop.eup %2130 }
0x1425   :  { %1999 = vmatmul.msk.f32.vlgmr.msrb.gmra.mxu3 %vm67_vm0, %v2131_v35 }
0x14a8   :  { %v1886_v16 = vpop.f32.mrf.mxu3 }
0x14a9   :  { %v1887_v36 = vadd.f32 %v2035_v33, %v1886_v16 }
0x14ab   :  { %1889 = vst [vmem:[#allocation2] sm:$0x3] %v1887_v36 }
0x14ac   :  { %1900 = dma.vmem_to_hbm [thread:$0]  %s1896_s10, 32, %s1898_s12, [#allocation3]  }
0x14ad   :  { %2156 = dma.done.wait [#allocation3], 32  }
0x14ae   :  { %2157 = vsyncadd [#allocation3], 4294967264 }
0x14af   :  { %1905 = vsyncpa [#allocation3], 1 }

</bundles_post_ra>
